<compile_context>
chip_gen: v5e
topology: v5e:2x2
jax: 0.10.0
libtpu: 0.0.40
codegen_flags: <defaults>
</compile_context>

<pallas_src>
import jax
import jax.numpy as jnp
from jax.experimental import pallas as pl
from jax.experimental.pallas import tpu as pltpu

# ---- model dims (mirror the PyTorch module) --------------------------------
action_space = [
    (e, a, r)
    for e in [i / 10 for i in range(-10, 11)]
    for a in [i / 10 for i in range(-10, 11)]
    for r in [i / 10 for i in range(-10, 11)]
]
N_ACTIONS = len(action_space)            # 9261
N_OBS = 4
HIDDEN = 128

TN = 2432                                # output tile width (19 * 128 lanes)
N_PAD = pl.cdiv(N_ACTIONS, TN) * TN      # 9728
N_TILES = N_PAD // TN                    # 4
SUBLANE = 8                              # batch padded to a full sublane
MAX_TB = 256                             # batch tile cap (VMEM safety)
PAD_BIAS = -1e9                          # padded action columns never win argmax


def _dqn_kernel(x_ref, w1_ref, b1_ref, w2_ref, b2_ref, w3_ref, b3_ref,
                out_ref, h_ref):
    k = pl.program_id(2)                 # w3 column tile within this core

    # The hidden state is tiny (TB x 128).  Recompute it whenever a new batch
    # tile starts (and once per core on v7x) so the VMEM scratch is always
    # initialized before it is read, regardless of how the grid is sharded.
    @pl.when(k == 0)
    def _():
        h1 = jnp.dot(x_ref[...], w1_ref[...],
                     preferred_element_type=jnp.float32) + b1_ref[...]
        h1 = jnp.maximum(h1, 0.0)                           # F.relu
        h2 = jnp.dot(h1, w2_ref[...],
                     preferred_element_type=jnp.float32) + b2_ref[...]
        h_ref[...] = jnp.maximum(h2, 0.0)                   # F.relu

    # Final linear layer.  w3 streams from HBM in bf16 (the dominant DMA);
    # upcast in VMEM and accumulate in f32 on the MXU.
    w3 = w3_ref[...].astype(jnp.float32)
    out_ref[...] = (jnp.dot(h_ref[...], w3,
                            preferred_element_type=jnp.float32)
                    + b3_ref[...])


def _num_tensorcores():
    """2 TensorCores per chip only on v7x; default to 1 (v5e/v6e/...)."""
    try:
        kind = jax.devices()[0].device_kind.lower().replace(" ", "")
    except Exception:
        return 1
    return 2 if ("v7" in kind or "7x" in kind) else 1


def dqn_forward_padded(x, params, num_cores=None):
    """Runs the kernel; returns the padded (B_pad, N_PAD) Q-value matrix.

    Padded action columns evaluate to ~PAD_BIAS (very negative), so callers
    doing argmax over actions can consume this output directly and avoid the
    extra HBM copy of a lane-dim slice.
    """
    w1, b1, w2, b2, w3p, b3p = params
    assert w3p.shape == (N_TILES, HIDDEN, TN), "pass params from init_params()"
    assert b3p.shape == (1, N_PAD), "pass params from init_params()"

    if num_cores is None:
        num_cores = _num_tensorcores()
    assert num_cores in (1, 2) and N_TILES % num_cores == 0
    inner_tiles = N_TILES // num_cores

    B = x.shape[0]
    if B <= MAX_TB:
        tb = pl.cdiv(B, SUBLANE) * SUBLANE        # pad batch to a full sublane
    else:
        tb = MAX_TB                               # tile large batches
    b_pad = pl.cdiv(B, tb) * tb
    if b_pad != B:
        x = jnp.pad(x, ((0, b_pad - B), (0, 0)))
    b_tiles = b_pad // tb

    grid = (num_cores, b_tiles, inner_tiles)

    def _col(c, k):
        return c * inner_tiles + k

    flops = (2 * b_pad * (N_OBS * HIDDEN + HIDDEN * HIDDEN) * num_cores
             + 2 * b_pad * HIDDEN * N_PAD)
    bytes_accessed = (4 * b_pad * N_OBS
                      + 4 * (N_OBS * HIDDEN + HIDDEN + HIDDEN * HIDDEN + HIDDEN)
                      + 2 * HIDDEN * N_PAD            # bf16 w3 stream
                      + 4 * N_PAD                     # f32 b3
                      + 4 * b_pad * N_PAD)            # f32 output

    if num_cores > 1:
        # v7x: actually shard the w3 column tiles across the 2 TensorCores.
        dims = (pltpu.CORE_PARALLEL, pltpu.ARBITRARY, pltpu.ARBITRARY)
    else:
        dims = ("arbitrary", "arbitrary", "arbitrary")

    out = pl.pallas_call(
        _dqn_kernel,
        out_shape=jax.ShapeDtypeStruct((b_pad, N_PAD), jnp.float32),
        grid_spec=pltpu.PrefetchScalarGridSpec(
            num_scalar_prefetch=0,
            grid=grid,
            in_specs=[
                pl.BlockSpec((tb, N_OBS), lambda c, b, k: (b, 0)),        # x
                pl.BlockSpec((N_OBS, HIDDEN), lambda c, b, k: (0, 0)),    # w1
                pl.BlockSpec((1, HIDDEN), lambda c, b, k: (0, 0)),        # b1
                pl.BlockSpec((HIDDEN, HIDDEN), lambda c, b, k: (0, 0)),   # w2
                pl.BlockSpec((1, HIDDEN), lambda c, b, k: (0, 0)),        # b2
                pl.BlockSpec((None, HIDDEN, TN),                          # w3 tile
                             lambda c, b, k: (_col(c, k), 0, 0)),
                pl.BlockSpec((1, TN),                                     # b3 tile
                             lambda c, b, k: (0, _col(c, k))),
            ],
            out_specs=pl.BlockSpec((tb, TN), lambda c, b, k: (b, _col(c, k))),
            scratch_shapes=[pltpu.VMEM((tb, HIDDEN), jnp.float32)],
        ),
        compiler_params=pltpu.CompilerParams(dimension_semantics=dims),
        cost_estimate=pl.CostEstimate(
            flops=flops, transcendentals=0, bytes_accessed=bytes_accessed),
    )(x, w1, b1, w2, b2, w3p, b3p)
    return out


def dqn_forward(x, params, num_cores=None):
    """(B, N_OBS) -> (B, N_ACTIONS): exact view matching the PyTorch module."""
    out = dqn_forward_padded(x, params, num_cores=num_cores)
    return out[: x.shape[0], :N_ACTIONS]


def init_params(key, w3_dtype=jnp.bfloat16):
    """nn.Linear-style init (uniform +-1/sqrt(fan_in)).

    w3 is padded to N_PAD output columns, reshaped to (N_TILES, HIDDEN, TN) so
    each kernel grid step DMAs one contiguous tile, and stored in `w3_dtype`
    (bfloat16 by default since the forward pass is HBM-bound on this stream;
    pass jnp.float32 for bit-exact layer-3 weights).  b3's padded columns hold
    a large negative value so padded actions never win an argmax.
    """
    ks = jax.random.split(key, 6)

    def lin(kw, kb, fan_in, fan_out):
        bound = 1.0 / jnp.sqrt(jnp.float32(fan_in))
        w = jax.random.uniform(kw, (fan_in, fan_out), jnp.float32, -bound, bound)
        b = jax.random.uniform(kb, (1, fan_out), jnp.float32, -bound, bound)
        return w, b

    w1, b1 = lin(ks[0], ks[1], N_OBS, HIDDEN)
    w2, b2 = lin(ks[2], ks[3], HIDDEN, HIDDEN)
    w3, b3 = lin(ks[4], ks[5], HIDDEN, N_ACTIONS)

    w3p = jnp.pad(w3, ((0, 0), (0, N_PAD - N_ACTIONS)))
    w3p = jnp.transpose(w3p.reshape(HIDDEN, N_TILES, TN), (1, 0, 2))
    w3p = w3p.astype(w3_dtype)                       # contiguous per-tile, bf16
    b3p = jnp.pad(b3, ((0, 0), (0, N_PAD - N_ACTIONS)),
                  constant_values=PAD_BIAS)
    return (w1, b1, w2, b2, w3p, b3p)


def dqn_reference(x, params):
    """Pure-JAX reference using the same stored (bf16-rounded) weights."""
    w1, b1, w2, b2, w3p, b3p = params
    w3 = jnp.transpose(w3p, (1, 0, 2)).reshape(HIDDEN, N_PAD)
    w3 = w3[:, :N_ACTIONS].astype(jnp.float32)
    b3 = b3p[:, :N_ACTIONS]
    hp = jax.lax.Precision.HIGHEST
    h = jnp.maximum(jnp.dot(x, w1, precision=hp) + b1, 0.0)
    h = jnp.maximum(jnp.dot(h, w2, precision=hp) + b2, 0.0)
    return jnp.dot(h, w3, precision=hp) + b3


if __name__ == "__main__":
    key = jax.random.PRNGKey(0)
    kp, kx = jax.random.split(key)

    params = init_params(kp)
    B = 2
    x = jax.random.normal(kx, (B, N_OBS), jnp.float32)

    out = dqn_forward(x, params)
    out = jax.block_until_ready(out)
    assert out.shape == (B, N_ACTIONS), out.shape

    ref = dqn_reference(x, params)
    assert jnp.allclose(out, ref, atol=1e-3, rtol=1e-3), "mismatch vs reference"

    print("KERNEL_OK")
</pallas_src>

<mosaic_0001>
module attributes {stable_mosaic.version = 11 : i64} {
  func.func @_dqn_kernel(%arg0: i32, %arg1: i32, %arg2: i32, %arg3: memref<8x4xf32, #tpu.memory_space<vmem>>, %arg4: memref<4x128xf32, #tpu.memory_space<vmem>>, %arg5: memref<1x128xf32, #tpu.memory_space<vmem>>, %arg6: memref<128x128xf32, #tpu.memory_space<vmem>>, %arg7: memref<1x128xf32, #tpu.memory_space<vmem>>, %arg8: memref<1x128x2432xbf16, #tpu.memory_space<vmem>>, %arg9: memref<1x2432xf32, #tpu.memory_space<vmem>>, %arg10: memref<8x2432xf32, #tpu.memory_space<vmem>>, %arg11: memref<8x128xf32, #tpu.memory_space<vmem>>) attributes {dimension_semantics = [#tpu.dimension_semantics<arbitrary>, #tpu.dimension_semantics<arbitrary>, #tpu.dimension_semantics<arbitrary>], iteration_bounds = array<i64: 1, 1, 4>, scalar_prefetch = 0 : i64, scratch_operands = 1 : i64, tpu.core_type = #tpu.core_type<tc>, window_params = [{transform_indices = @transform_0, window_bounds = array<i64: 8, 4>}, {pipeline_mode = #tpu.pipeline_mode<synchronous>, transform_indices = @transform_1, window_bounds = array<i64: 4, 128>}, {pipeline_mode = #tpu.pipeline_mode<synchronous>, transform_indices = @transform_2, window_bounds = array<i64: 1, 128>}, {pipeline_mode = #tpu.pipeline_mode<synchronous>, transform_indices = @transform_3, window_bounds = array<i64: 128, 128>}, {pipeline_mode = #tpu.pipeline_mode<synchronous>, transform_indices = @transform_4, window_bounds = array<i64: 1, 128>}, {transform_indices = @transform_5, window_bounds = array<i64: 1, 128, 2432>}, {transform_indices = @transform_6, window_bounds = array<i64: 1, 2432>}, {transform_indices = @transform_7, window_bounds = array<i64: 8, 2432>}]} {
    %c0_i32 = arith.constant 0 : i32
    %0 = arith.cmpi eq, %arg2, %c0_i32 : i32
    %1 = arith.extui %0 : i1 to i32
    %c0_i32_0 = arith.constant 0 : i32
    %2 = arith.cmpi ne, %1, %c0_i32_0 : i32
    scf.if %2 {
      %c0_9 = arith.constant 0 : index
      %c0_10 = arith.constant 0 : index
      %12 = vector.load %arg3[%c0_9, %c0_10] : memref<8x4xf32, #tpu.memory_space<vmem>>, vector<8x4xf32>
      %c0_11 = arith.constant 0 : index
      %c0_12 = arith.constant 0 : index
      %13 = vector.load %arg4[%c0_11, %c0_12] : memref<4x128xf32, #tpu.memory_space<vmem>>, vector<4x128xf32>
      %cst_13 = arith.constant dense<0.000000e+00> : vector<8x128xf32>
      %14 = tpu.matmul %12, %13, %cst_13 {dimension_numbers = #tpu.dot_dimension_numbers<[1], [0], [0], [1], [0, 0, 1, 1], [], []>} : vector<8x4xf32>, vector<4x128xf32>, vector<8x128xf32> -> vector<8x128xf32>
      %c0_14 = arith.constant 0 : index
      %c0_15 = arith.constant 0 : index
      %15 = vector.load %arg5[%c0_14, %c0_15] : memref<1x128xf32, #tpu.memory_space<vmem>>, vector<1x128xf32>
      %16 = vector.broadcast %15 : vector<1x128xf32> to vector<8x128xf32>
      %17 = arith.addf %14, %16 : vector<8x128xf32>
      %cst_16 = arith.constant 0.000000e+00 : f32
      %18 = vector.broadcast %cst_16 : f32 to vector<8x128xf32>
      %19 = arith.maximumf %17, %18 : vector<8x128xf32>
      %c0_17 = arith.constant 0 : index
      %c0_18 = arith.constant 0 : index
      %20 = vector.load %arg6[%c0_17, %c0_18] : memref<128x128xf32, #tpu.memory_space<vmem>>, vector<128x128xf32>
      %cst_19 = arith.constant dense<0.000000e+00> : vector<8x128xf32>
      %21 = tpu.matmul %19, %20, %cst_19 {dimension_numbers = #tpu.dot_dimension_numbers<[1], [0], [0], [1], [0, 0, 1, 1], [], []>} : vector<8x128xf32>, vector<128x128xf32>, vector<8x128xf32> -> vector<8x128xf32>
      %c0_20 = arith.constant 0 : index
      %c0_21 = arith.constant 0 : index
      %22 = vector.load %arg7[%c0_20, %c0_21] : memref<1x128xf32, #tpu.memory_space<vmem>>, vector<1x128xf32>
      %23 = vector.broadcast %22 : vector<1x128xf32> to vector<8x128xf32>
      %24 = arith.addf %21, %23 : vector<8x128xf32>
      %cst_22 = arith.constant 0.000000e+00 : f32
      %25 = vector.broadcast %cst_22 : f32 to vector<8x128xf32>
      %26 = arith.maximumf %24, %25 : vector<8x128xf32>
      %c0_23 = arith.constant 0 : index
      %c0_24 = arith.constant 0 : index
      %27 = vector.load %arg11[%c0_23, %c0_24] : memref<8x128xf32, #tpu.memory_space<vmem>>, vector<8x128xf32>
      tpu.vector_store %arg11[%c0_23, %c0_24], %26 {strides = array<i32>} : memref<8x128xf32, #tpu.memory_space<vmem>>, vector<8x128xf32>,
    } else {
    }
    %c0 = arith.constant 0 : index
    %c0_1 = arith.constant 0 : index
    %c0_2 = arith.constant 0 : index
    %3 = vector.load %arg8[%c0, %c0_1, %c0_2] : memref<1x128x2432xbf16, #tpu.memory_space<vmem>>, vector<1x128x2432xbf16>
    %4 = vector.shape_cast %3 : vector<1x128x2432xbf16> to vector<128x2432xbf16>
    %5 = arith.extf %4 : vector<128x2432xbf16> to vector<128x2432xf32>
    %c0_3 = arith.constant 0 : index
    %c0_4 = arith.constant 0 : index
    %6 = vector.load %arg11[%c0_3, %c0_4] : memref<8x128xf32, #tpu.memory_space<vmem>>, vector<8x128xf32>
    %cst = arith.constant dense<0.000000e+00> : vector<8x2432xf32>
    %7 = tpu.matmul %6, %5, %cst {dimension_numbers = #tpu.dot_dimension_numbers<[1], [0], [0], [1], [0, 0, 1, 1], [], []>} : vector<8x128xf32>, vector<128x2432xf32>, vector<8x2432xf32> -> vector<8x2432xf32>
    %c0_5 = arith.constant 0 : index
    %c0_6 = arith.constant 0 : index
    %8 = vector.load %arg9[%c0_5, %c0_6] : memref<1x2432xf32, #tpu.memory_space<vmem>>, vector<1x2432xf32>
    %9 = vector.broadcast %8 : vector<1x2432xf32> to vector<8x2432xf32>
    %10 = arith.addf %7, %9 : vector<8x2432xf32>
    %c0_7 = arith.constant 0 : index
    %c0_8 = arith.constant 0 : index
    %11 = vector.load %arg10[%c0_7, %c0_8] : memref<8x2432xf32, #tpu.memory_space<vmem>>, vector<8x2432xf32>
    tpu.vector_store %arg10[%c0_7, %c0_8], %10 {strides = array<i32>} : memref<8x2432xf32, #tpu.memory_space<vmem>>, vector<8x2432xf32>,
    return
  }
  func.func @transform_0(%arg0: i32, %arg1: i32, %arg2: i32) -> (i32, i32) {
    %c0_i32 = arith.constant 0 : i32
    %c0_i32_0 = arith.constant 0 : i32
    return %arg1, %c0_i32 : i32, i32
  }
  func.func @transform_1(%arg0: i32, %arg1: i32, %arg2: i32) -> (i32, i32) {
    %c0_i32 = arith.constant 0 : i32
    %c0_i32_0 = arith.constant 0 : i32
    %c0_i32_1 = arith.constant 0 : i32
    return %c0_i32, %c0_i32_0 : i32, i32
  }
  func.func @transform_2(%arg0: i32, %arg1: i32, %arg2: i32) -> (i32, i32) {
    %c0_i32 = arith.constant 0 : i32
    %c0_i32_0 = arith.constant 0 : i32
    %c0_i32_1 = arith.constant 0 : i32
    return %c0_i32, %c0_i32_0 : i32, i32
  }
  func.func @transform_3(%arg0: i32, %arg1: i32, %arg2: i32) -> (i32, i32) {
    %c0_i32 = arith.constant 0 : i32
    %c0_i32_0 = arith.constant 0 : i32
    %c0_i32_1 = arith.constant 0 : i32
    return %c0_i32, %c0_i32_0 : i32, i32
  }
  func.func @transform_4(%arg0: i32, %arg1: i32, %arg2: i32) -> (i32, i32) {
    %c0_i32 = arith.constant 0 : i32
    %c0_i32_0 = arith.constant 0 : i32
    %c0_i32_1 = arith.constant 0 : i32
    return %c0_i32, %c0_i32_0 : i32, i32
  }
  func.func @transform_5(%arg0: i32, %arg1: i32, %arg2: i32) -> (i32, i32, i32) {
    %c4_i32 = arith.constant 4 : i32
    %0 = arith.muli %arg0, %c4_i32 : i32
    %1 = arith.addi %0, %arg2 : i32
    %c0_i32 = arith.constant 0 : i32
    %c0_i32_0 = arith.constant 0 : i32
    %c0_i32_1 = arith.constant 0 : i32
    return %1, %c0_i32, %c0_i32_0 : i32, i32, i32
  }
  func.func @transform_6(%arg0: i32, %arg1: i32, %arg2: i32) -> (i32, i32) {
    %c4_i32 = arith.constant 4 : i32
    %0 = arith.muli %arg0, %c4_i32 : i32
    %1 = arith.addi %0, %arg2 : i32
    %c0_i32 = arith.constant 0 : i32
    %c0_i32_0 = arith.constant 0 : i32
    return %c0_i32, %1 : i32, i32
  }
  func.func @transform_7(%arg0: i32, %arg1: i32, %arg2: i32) -> (i32, i32) {
    %c4_i32 = arith.constant 4 : i32
    %0 = arith.muli %arg0, %c4_i32 : i32
    %1 = arith.addi %0, %arg2 : i32
    %c0_i32 = arith.constant 0 : i32
    return %arg1, %1 : i32, i32
  }
}

</mosaic_0001>

<bundles_post_ra>
// kernel: tpu_custom_call.1
= control target key start
LH: loop header
LB: loop body
LE: loop exit
PB: predicated region body
PF: predicated region fallthrough
CT: control target
= control target key end

     0   :  { %s2736_s0 = inlined_call_operand.vmem [shape: f32[8,4], index: 0, kind: input, shape index: {}]   ;;  %s2737_s1 = inlined_call_operand.hbm [shape: f32[4,128], index: 1, kind: input, shape index: {}]   ;;  %s2738_s2 = inlined_call_operand.hbm [shape: f32[1,128], index: 2, kind: input, shape index: {}]   ;;  %s2739_s3 = inlined_call_operand.hbm [shape: f32[128,128], index: 3, kind: input, shape index: {}]   ;;  %s2740_s4 = inlined_call_operand.hbm [shape: f32[1,128], index: 4, kind: input, shape index: {}]   ;;  %s2741_s5 = inlined_call_operand.hbm [shape: bf16[4,128,2432], index: 5, kind: input, shape index: {}]   ;;  %s2742_s6 = inlined_call_operand.hbm [shape: f32[1,9728], index: 6, kind: input, shape index: {}]   ;;  %s2743_s7 = inlined_call_operand.hbm [shape: f32[8,9728], index: 7, kind: output, shape index: {}]  }
   0x1   :  { %2750 = sst [smem:[#allocation25_spill]] %s2737_s1 }
   0x2   :  { %2751 = sst [smem:[#allocation26_spill]] %s2738_s2 }
   0x3   :  { %2752 = sst [smem:[#allocation27_spill]] %s2739_s3 }
   0x4   :  { %2753 = sst [smem:[#allocation28_spill]] %s2741_s5 }
   0x5   :  { %12 = vsyncpa [#allocation4], 0 }
   0x6   :  { %13 = vsyncpa [#allocation7], 0 }
   0x7   :  { %14 = vsyncpa [#allocation10], 0 }
   0x8   :  { %15 = vsyncpa [#allocation5], 0 }
   0x9   :  { %17 = vsyncpa [#allocation5 + $0x1], 0  ;;  %s2095_s24 = smov 0   ;;  %s2097_s25 = smov 0  }
   0xa   :  { %s2099_s26 = smov 0   ;;  %s2101_s27 = smov 0  }
   0xb   :  { %s2103_s28 = smov 0   ;;  %s2105_s29 = smov 0  }
   0xc LB: > { %2754 = sst [smem:[#allocation19_spill]] %s2025_s24  ;;  %s2126_s30 = sadd.s32 4294967295, %s2045_s29   ;;  %s2045_s29 = sphi %s2105_s29, %s23_s29   ;;  %s2041_s28 = sphi %s2103_s28, %s2779_s28   ;;  %s2037_s27 = sphi %s2101_s27, %s2778_s27   ;;  %s2033_s26 = sphi %s2099_s26, %s2774_s26   ;;  %s2029_s25 = sphi %s2097_s25, %s2777_s25   ;;  %s2025_s24 = sphi %s2095_s24, %s2776_s24  }
   0xd   : > { %2755 = sst [smem:[#allocation20_spill]] %s2033_s26  ;;  %s1629_s8 = sadd.s32 4294967294, %s2045_s29  }
   0xe   : > { %2756 = sst [smem:[#allocation21_spill]] %s2045_s29  ;;  %p176_p0 = scmp.ne.s32.totalorder %s2029_s25, %s2025_s24 }
   0xf   : > { %p177_p1 = scmp.eq.s32.totalorder %s2126_s30, 0  ;;  %p236_p2 = scmp.eq.s32.totalorder %s2126_s30, 3 }
  0x10   : > { %p242_p3 = scmp.eq.s32.totalorder %s1629_s8, 3  ;;  %p1630_p5 = scmp.ge.s32.totalorder %s2045_s29, 1 }
  0x11   : > { %p2135_p4 = por %p177_p1, %p176_p0  ;;  %p249_p7 = scmp.lt.s32.totalorder %s2045_s29, 5 }
  0x12   : > { %p2140_p6 = por %p242_p3, %p176_p0  ;;  %s2760_s1 = sld [smem:[#allocation25_spill]] }
  0x13   : > { %p2148_p8 = pnand %p1630_p5, %p249_p7  ;;  %s2047_s15 = smov [#allocation3]  }
  0x14   : > { %s2758_s10 = scalar_select %p2140_p6, 1, 0 }
  0x15   : > { %p1678_p9 = pneg %p2148_p8  ;;  %s270_s16 = sshll.u32 %s2047_s15, 4  ;;  %s271_s16 = int_to_ptr.vmem [resolvable:$true] %s270_s16 }
  0x16   : > { %2759 = sst [smem:[#allocation22_spill]] %s2758_s10  ;;  %s2048_s21 = smov [#allocation6]  }
  0x17   : > { %s2762_s2 = sld [smem:[#allocation26_spill]]  ;;  %p2159_p10 = pnand %p1678_p9, %p177_p1 }
  0x18   : > { %s268_s13 = sshll.u32 %s2760_s1, 4  ;;  %s282_s22 = sshll.u32 %s2048_s21, 4  ;;  %s269_s13 = int_to_ptr.hbm [resolvable:$true] %s268_s13  ;;  %s283_s22 = int_to_ptr.vmem [resolvable:$true] %s282_s22 }
  0x19   : > { %1681 = dma.hbm_to_vmem [thread:$0]  (!%p2159_p10), %s269_s13, 64, %s271_s16, [#allocation4]  }
  0x1a   : > { %s35_s23 = sadd.s32 1, %s2041_s28  ;;  %s163_s8 = sadd.s32 1, %s2033_s26 }
  0x1b   : > { %p36_p11 = scmp.ge.s32.totalorder %s35_s23, 4  ;;  %p170_p12 = scmp.ne.s32.totalorder %s2033_s26, %s2029_s25 }
  0x1c   : > { %p171_p13 = scmp.eq.s32.totalorder %s2045_s29, 0  ;;  %p1706_p0 = scmp.lt.s32.totalorder %s2045_s29, 4 }
  0x1d   : > { %s280_s19 = sshll.u32 %s2762_s2, 4  ;;  %s2781_s23 = smov (%p36_p11, %s35_s23), 0  ;;  %s281_s19 = int_to_ptr.hbm [resolvable:$true] %s280_s19 }
  0x1e   : > { %1684 = dma.hbm_to_vmem [thread:$0]  (!%p2159_p10), %s281_s19, 16, %s283_s22, [#allocation7]  }
  0x1f   : > { %2764 = sst [smem:[#allocation23_spill]] %s2781_s23  ;;  %p172_p3 = por %p171_p13, %p170_p12 }
  0x20   : > { %p2177_p5 = por %p236_p2, %p170_p12  ;;  %s160_s12 = ssub.s32 %s2041_s28, %s2781_s23 }
  0x21   : > { %s319_s13 = sand.u32 1, %s2045_s29   ;;  %p161_p7 = scmp.eq.s32.totalorder %s160_s12, 0 }
  0x22   : > { %s321_s15 = sand.u32 1, %s2033_s26   ;;  %s1651_s16 = smul.u32 1216, %s2041_s28 }
  0x23   : > { %s2187_s17 = scalar_select %p161_p7, %s2033_s26, %s163_s8  }
  0x24   : > { %s1650_s18 = smul.u32 1216, %s321_s15  ;;  %s2767_s5 = sld [smem:[#allocation28_spill]] }
  0x25   : > { %2766 = sst [smem:[#allocation24_spill]] %s2187_s17  ;;  %p2194_p9 = pnand %p1706_p0, %p172_p3 }
  0x26   : > { %s323_s23 = scalar_lea.vmem [#allocation11], %s1650_s18  ;;  %s2769_s3 = sld [smem:[#allocation27_spill]] }
  0x27   : > { %s333_s12 = sshll.u32 %s323_s23, 4  ;;  %s320_s26 = scalar_lea.sflag [#allocation4], %s319_s13  ;;  %s334_s12 = int_to_ptr.vmem [resolvable:$true] %s333_s12 }
  0x28   : > { %s2049_s24 = smov 1216   ;;  %s2051_s19 = smov [#allocation8]  }
  0x29   : > { %s293_s21 = sshll.u32 %s2051_s19, 4  ;;  %s306_s10 = sshll.u32 %s2740_s4, 4  ;;  %s294_s21 = int_to_ptr.vmem [resolvable:$true] %s293_s21  ;;  %s307_s10 = int_to_ptr.hbm [resolvable:$true] %s306_s10 }
  0x2a   : > { %s330_s22 = scalar_lea.hbm %s2767_s5, %s1651_s16  ;;  %s2050_s16 = smov 76  }
  0x2b   : > { %s331_s1 = sshll.u32 %s330_s22, 4  ;;  %s2052_s22 = smov 128   ;;  %s332_s1 = int_to_ptr.hbm [resolvable:$true] %s331_s1 }
  0x2c   : > { %s291_s17 = sshll.u32 %s2769_s3, 4  ;;  %s2053_s5 = smov 8   ;;  %s292_s17 = int_to_ptr.hbm [resolvable:$true] %s291_s17 }
  0x2d   : > { %1694 = dma.hbm_to_vmem [thread:$0]  (!%p2194_p9), %s332_s1, 19456, %s334_s12, %s320_s26, %s2049_s24, %s2049_s24, %s2050_s16  }
  0x2e   : > { %1687 = dma.hbm_to_vmem [thread:$0]  (!%p2159_p10), %s292_s17, 2048, %s294_s21, [#allocation7], %s2052_s22, %s2052_s22, %s2053_s5  }
  0x2f   : > { %s2054_s13 = smov [#allocation9]   ;;  %s1652_s3 = smul.u32 19, %s321_s15 }
  0x30   : > { %s308_s8 = sshll.u32 %s2054_s13, 4  ;;  %s350_s1 = smul.u32 19, %s2041_s28  ;;  %s309_s8 = int_to_ptr.vmem [resolvable:$true] %s308_s8 }
  0x31   : > { %1690 = dma.hbm_to_vmem [thread:$0]  (!%p2159_p10), %s307_s10, 16, %s309_s8, [#allocation10]  }
  0x32   : > { %s347_s24 = scalar_lea.vmem [#allocation12], %s1652_s3  ;;  %s353_s29 = scalar_lea.hbm %s2742_s6, %s350_s1 }
  0x33   : > { %s357_s12 = sshll.u32 %s347_s24, 4  ;;  %s355_s5 = sshll.u32 %s353_s29, 4  ;;  %s358_s12 = int_to_ptr.vmem [resolvable:$true] %s357_s12  ;;  %s356_s5 = int_to_ptr.hbm [resolvable:$true] %s355_s5 }
  0x34   : > { %1697 = dma.hbm_to_vmem [thread:$0]  (!%p2194_p9), %s356_s5, 304, %s358_s12, %s320_s26  }
  0x35   : > { %366 = sbr.rel (%p2148_p8) target bundleno = 640 (0x280), region = 48 }
  0x3a   : > { %2004 = dma.done.wait (%p177_p1), [#allocation4], 64  }
  0x3b   : > { %2006 = vsyncadd (%p177_p1), [#allocation4], 4294967232 }
  0x3c   : > { %2008 = dma.done.wait (%p177_p1), [#allocation7], 2064  }
  0x3d   : > { %2010 = vsyncadd (%p177_p1), [#allocation7], 4294965232 }
  0x3e   : > { %2012 = dma.done.wait (%p177_p1), [#allocation10], 16  }
  0x3f   : > { %2014 = vsyncadd (%p177_p1), [#allocation10], 4294967280  ;;  %s388_s2 = sand.u32 1, %s2126_s30   ;;  %s2232_s3 = sand.u32 1, %s2029_s25  }
  0x40   : > { %s1653_s26 = smul.u32 1216, %s2232_s3  ;;  %s389_s29 = scalar_lea.sflag [#allocation4], %s388_s2 }
  0x42   : > { %s2235_s14 = scalar_lea.vmem [#allocation11], %s1653_s26 }
  0x43   : > { %2016 = dma.done.wait (%p2135_p4), %s389_s29, 19760  }
  0x44   : > { %2018 = vsyncadd (%p2135_p4), %s389_s29, 4294947536  ;;  %s1654_s20 = smul.u32 19, %s2232_s3  ;;  %p1643_p1 = scmp.ne.s32.totalorder %s2037_s27, 0 }
  0x45   : > { %s1655_s15 = smul.u32 152, %s2232_s3 }
  0x46   : > { %s2243_s17 = scalar_lea.vmem [#allocation12], %s1654_s20  ;;  %458 = sbr.rel (%p1643_p1) target bundleno = 338 (0x152), region = 76 }
  0x47   : > { %s2245_s21 = scalar_lea.vmem [#allocation13], %s1655_s15 }
  0x4b   : > { %v460_v0 = vld [vmem:[#allocation3] sm:$0xf]  ;;  %vm469_vm0 = vcmask 1043456   ;;  %v459_v1 = vld [vmem:[%s2736_s0] sm:$0xff]  ;;  %vm465_vm1 = vcmask 31744   ;;  %v507_v4 = vld [vmem:[#allocation8 + $0x68] sm:$0xff] }
  0x4c   : > { %v509_v2 = vld [vmem:[#allocation8 + $0x78] sm:$0xff]  ;;  %1644 = vmatpush.msk.msra.mxu0 %vm469_vm0, %v460_v0  ;;  %v508_v3 = vld [vmem:[#allocation8 + $0x70] sm:$0xff]  ;;  %v506_v5 = vld [vmem:[#allocation8 + $0x60] sm:$0xff] }
  0x4d   : > { %514 = vmatpush.msra.mxu1 %v509_v2  ;;  %1645 = vmatmul.msk.f32.vlgmr.msra.gmra.mxu0 %vm465_vm1, %v459_v1  ;;  %v505_v6 = vld [vmem:[#allocation8 + $0x58] sm:$0xff]  ;;  %v504_v7 = vld [vmem:[#allocation8 + $0x50] sm:$0xff]  ;;  %v503_v8 = vld [vmem:[#allocation8 + $0x48] sm:$0xff] }
  0x4e   : > { %v502_v9 = vld [vmem:[#allocation8 + $0x40] sm:$0xff]  ;;  %v501_v10 = vld [vmem:[#allocation8 + $0x38] sm:$0xff]  ;;  %v500_v11 = vld [vmem:[#allocation8 + $0x30] sm:$0xff] }
  0x4f   : > { %515 = vmatpush.msra.mxu1 %v508_v3  ;;  %v499_v12 = vld [vmem:[#allocation8 + $0x28] sm:$0xff]  ;;  %v498_v13 = vld [vmem:[#allocation8 + $0x20] sm:$0xff]  ;;  %v497_v14 = vld [vmem:[#allocation8 + $0x18] sm:$0xff] }
  0x50   : > { %v496_v15 = vld [vmem:[#allocation8 + $0x10] sm:$0xff]  ;;  %v495_v16 = vld [vmem:[#allocation8 + $0x8] sm:$0xff]  ;;  %v494_v17 = vld [vmem:[#allocation8] sm:$0xff] }
  0x51   : > { %516 = vmatpush.msra.mxu1 %v507_v4  ;;  %v1768_v18 = vld [vmem:[#allocation6] ss:$0 sm:$0xff]  ;;  %v1769_v22 = vld [vmem:[#allocation9] ss:$0 sm:$0xff] }
  0x53   : > { %517 = vmatpush.msra.mxu1 %v506_v5 }
  0x55   : > { %518 = vmatpush.msra.mxu1 %v505_v6 }
  0x57   : > { %519 = vmatpush.msra.mxu1 %v504_v7 }
  0x59   : > { %520 = vmatpush.msra.mxu1 %v503_v8 }
  0x5b   : > { %521 = vmatpush.msra.mxu1 %v502_v9 }
  0x5d   : > { %522 = vmatpush.msra.mxu1 %v501_v10 }
  0x5f   : > { %523 = vmatpush.msra.mxu1 %v500_v11 }
  0x61   : > { %524 = vmatpush.msra.mxu1 %v499_v12 }
  0x63   : > { %525 = vmatpush.msra.mxu1 %v498_v13 }
  0x65   : > { %526 = vmatpush.msra.mxu1 %v497_v14 }
  0x67   : > { %527 = vmatpush.msra.mxu1 %v496_v15 }
  0x69   : > { %528 = vmatpush.msra.mxu1 %v495_v16 }
  0x6b   : > { %529 = vmatpush.msra.mxu1 %v494_v17 }
  0xca   : > { %v490_v19 = vpop.f32.mrf.mxu0 }
  0xcb   : > { %v491_v20 = vadd.f32 %v1768_v18, %v490_v19 }
  0xcd   : > { %v493_v21 = vmax.f32 %v491_v20, 0.0 }
  0xcf   : > { %530 = vmatmul.f32.vlgmr.msra.gmra.mxu1 %v493_v21 }
 0x14c   : > { %v531_v23 = vpop.f32.mrf.mxu1 }
 0x14d   : > { %v532_v24 = vadd.f32 %v1769_v22, %v531_v23 }
 0x14f   : > { %v534_v25 = vmax.f32 %v532_v24, 0.0 }
 0x151   : > { %535 = vst [vmem:[#allocation2] sm:$0xff] %v534_v25 }
 0x152 PF: > { %v687_v26 = vld [vmem:[%s2235_s14 + $0x47c] sm:$0xff]  ;;  %v2253_v27 = vld [vmem:[%s2235_s14 + $0x430] sm:$0xff]  ;;  %v2256_v28 = vld [vmem:[%s2235_s14 + $0x3e4] sm:$0xff]  ;;  %s1649_s9 = smul.u32 152, %s2037_s27  ;;  %s1462_s27 = sshll.u32 %s2245_s21, 4  ;;  %s1463_s27 = int_to_ptr.vmem [resolvable:$true] %s1462_s27 }
 0x153   : > { %v983_v29 = vunpack.c.l.bf16 %v687_v26  ;;  %v964_v30 = vunpack.c.l.bf16 %v2253_v27  ;;  %v686_v31 = vld [vmem:[%s2235_s14 + $0x474] sm:$0xff]  ;;  %v676_v32 = vld [vmem:[%s2235_s14 + $0x428] sm:$0xff]  ;;  %v984_v33 = vunpack.c.h.bf16 %v687_v26  ;;  %v666_v38 = vld [vmem:[%s2235_s14 + $0x3dc] sm:$0xff]  ;;  %v945_v39 = vunpack.c.l.bf16 %v2256_v28  ;;  %s1445_s8 = scalar_lea.sflag [#allocation5], %s2232_s3  ;;  %s1971_s19 = scalar_lea.hbm %s2743_s7, 608 }
 0x154   : > { %v981_v34 = vunpack.c.l.bf16 %v686_v31  ;;  %v982_v35 = vunpack.c.h.bf16 %v686_v31  ;;  %v2262_v36 = vld [vmem:[%s2235_s14 + $0x398] sm:$0xff]  ;;  %v962_v37 = vunpack.c.l.bf16 %v676_v32  ;;  %v963_v40 = vunpack.c.h.bf16 %v676_v32  ;;  %v656_v41 = vld [vmem:[%s2235_s14 + $0x390] sm:$0xff]  ;;  %v646_v46 = vld [vmem:[%s2235_s14 + $0x344] sm:$0xff]  ;;  %s1460_s10 = scalar_lea.hbm %s2743_s7, %s1649_s9 }
 0x155   : > { %1085 = vmatpush.msra.mxu2 %v983_v29  ;;  %1105 = vmatpush.msra.mxu3 %v984_v33  ;;  %v2268_v42 = vld [vmem:[%s2235_s14 + $0x34c] sm:$0xff]  ;;  %v943_v43 = vunpack.c.l.bf16 %v666_v38  ;;  %v944_v44 = vunpack.c.h.bf16 %v666_v38  ;;  %v926_v45 = vunpack.c.l.bf16 %v2262_v36  ;;  %v2273_v47 = vld [vmem:[%s2235_s14 + $0x300] sm:$0xff]  ;;  %v924_v48 = vunpack.c.l.bf16 %v656_v41  ;;  %v636_v51 = vld [vmem:[%s2235_s14 + $0x2f8] sm:$0xff]  ;;  %s1464_s13 = sshll.u32 %s1460_s10, 4  ;;  %s1465_s13 = int_to_ptr.hbm [resolvable:$true] %s1464_s13 }
 0x156   : > { %1045 = vmatpush.msra.mxu0 %v981_v34  ;;  %1065 = vmatpush.msra.mxu1 %v982_v35  ;;  %v925_v49 = vunpack.c.h.bf16 %v656_v41  ;;  %v907_v50 = vunpack.c.l.bf16 %v2268_v42  ;;  %v2278_v52 = vld [vmem:[%s2235_s14 + $0x2b4] sm:$0xff]  ;;  %v905_v53 = vunpack.c.l.bf16 %v646_v46  ;;  %v906_v54 = vunpack.c.h.bf16 %v646_v46  ;;  %v626_v56 = vld [vmem:[%s2235_s14 + $0x2ac] sm:$0xff]  ;;  %v616_v61 = vld [vmem:[%s2235_s14 + $0x260] sm:$0xff]  ;;  %s1965_s1 = sshra.s32 %s1465_s13, 4  ;;  %s1966_s1 = int_to_ptr.hbm [resolvable:$true] %s1965_s1 }
 0x157   : > { %1086 = vmatpush.msra.mxu2 %v964_v30  ;;  %v888_v55 = vunpack.c.l.bf16 %v2273_v47  ;;  %v2283_v57 = vld [vmem:[%s2235_s14 + $0x268] sm:$0xff]  ;;  %v886_v58 = vunpack.c.l.bf16 %v636_v51  ;;  %v887_v59 = vunpack.c.h.bf16 %v636_v51  ;;  %v869_v60 = vunpack.c.l.bf16 %v2278_v52  ;;  %v2288_v62 = vld [vmem:[%s2235_s14 + $0x21c] sm:$0xff]  ;;  %v606_v3 = vld [vmem:[%s2235_s14 + $0x214] sm:$0xff]  ;;  %s1967_s24 = scalar_lea.hbm %s1966_s1, 152  ;;  %p1972_p10 = scmp.lt.s32.totalorder %s1966_s1, %s2743_s7 }
 0x158   : > { %1046 = vmatpush.msra.mxu0 %v962_v37  ;;  %1066 = vmatpush.msra.mxu1 %v963_v40  ;;  %v867_v63 = vunpack.c.l.bf16 %v626_v56  ;;  %v868_v0 = vunpack.c.h.bf16 %v626_v56  ;;  %v965_v1 = vunpack.c.h.bf16 %v2253_v27  ;;  %v850_v2 = vunpack.c.l.bf16 %v2283_v57  ;;  %v2295_v5 = vld [vmem:[%s2235_s14 + $0x1d0] sm:$0xff]  ;;  %v596_v9 = vld [vmem:[%s2235_s14 + $0x1c8] sm:$0xff]  ;;  %v586_v15 = vld [vmem:[%s2235_s14 + $0x17c] sm:$0xff]  ;;  %p1968_p2 = scmp.ne.s32.totalorder %s1966_s1, %s1967_s24  ;;  %p1973_p11 = scmp.lt.s32.totalorder %s1971_s19, %s1967_s24 }
 0x159   : > { %1087 = vmatpush.msra.mxu2 %v945_v39  ;;  %v946_v4 = vunpack.c.h.bf16 %v2256_v28  ;;  %v848_v6 = vunpack.c.l.bf16 %v616_v61  ;;  %v849_v7 = vunpack.c.h.bf16 %v616_v61  ;;  %v831_v8 = vunpack.c.l.bf16 %v2288_v62  ;;  %v2301_v11 = vld [vmem:[%s2235_s14 + $0x184] sm:$0xff]  ;;  %v2307_v17 = vld [vmem:[%s2235_s14 + $0x138] sm:$0xff]  ;;  %v576_v21 = vld [vmem:[%s2235_s14 + $0x130] sm:$0xff] }
 0x15a   : > { %1047 = vmatpush.msra.mxu0 %v943_v43  ;;  %1067 = vmatpush.msra.mxu1 %v944_v44  ;;  %v927_v10 = vunpack.c.h.bf16 %v2262_v36  ;;  %v829_v12 = vunpack.c.l.bf16 %v606_v3  ;;  %v830_v13 = vunpack.c.h.bf16 %v606_v3  ;;  %v812_v14 = vunpack.c.l.bf16 %v2295_v5  ;;  %v2313_v23 = vld [vmem:[%s2235_s14 + $0xec] sm:$0xff]  ;;  %v566_v27 = vld [vmem:[%s2235_s14 + $0xe4] sm:$0xff]  ;;  %v556_v33 = vld [vmem:[%s2235_s14 + $0x98] sm:$0xff]  ;;  %p1969_p4 = pnand %p1968_p2, %p2177_p5  ;;  %p1974_p12 = por %p1973_p11, %p1972_p10 }
 0x15b   : > { %1088 = vmatpush.msra.mxu2 %v926_v45  ;;  %1106 = vmatpush.msra.mxu3 %v965_v1  ;;  %v908_v16 = vunpack.c.h.bf16 %v2268_v42  ;;  %v810_v18 = vunpack.c.l.bf16 %v596_v9  ;;  %v811_v19 = vunpack.c.h.bf16 %v596_v9  ;;  %v793_v20 = vunpack.c.l.bf16 %v2301_v11  ;;  %v2319_v29 = vld [vmem:[%s2235_s14 + $0xa0] sm:$0xff]  ;;  %v2325_v35 = vld [vmem:[%s2235_s14 + $0x54] sm:$0xff]  ;;  %v546_v39 = vld [vmem:[%s2235_s14 + $0x4c] sm:$0xff] }
 0x15c   : > { %1048 = vmatpush.msra.mxu0 %v924_v48  ;;  %1068 = vmatpush.msra.mxu1 %v925_v49  ;;  %v889_v22 = vunpack.c.h.bf16 %v2273_v47  ;;  %v791_v24 = vunpack.c.l.bf16 %v586_v15  ;;  %v792_v25 = vunpack.c.h.bf16 %v586_v15  ;;  %v774_v26 = vunpack.c.l.bf16 %v2307_v17  ;;  %v2331_v41 = vld [vmem:[%s2235_s14 + $0x8] sm:$0xff]  ;;  %v536_v46 = vld [vmem:[%s2235_s14] sm:$0xff]  ;;  %v678_v56 = vld [vmem:[%s2235_s14 + $0x438] sm:$0xff]  ;;  %p1970_p8 = pneg %p1969_p4 }
 0x15d   : > { %1089 = vmatpush.msra.mxu2 %v907_v50  ;;  %1107 = vmatpush.msra.mxu3 %v946_v4  ;;  %v870_v28 = vunpack.c.h.bf16 %v2278_v52  ;;  %v772_v30 = vunpack.c.l.bf16 %v576_v21  ;;  %v773_v31 = vunpack.c.h.bf16 %v576_v21  ;;  %v755_v32 = vunpack.c.l.bf16 %v2313_v23  ;;  %v2335_v45 = vld [vmem:[%s2235_s14 + $0x48c] sm:$0xff]  ;;  %v688_v50 = vld [vmem:[%s2235_s14 + $0x484] sm:$0xff] }
 0x15e   : > { %1049 = vmatpush.msra.mxu0 %v905_v53  ;;  %1069 = vmatpush.msra.mxu1 %v906_v54  ;;  %v851_v34 = vunpack.c.h.bf16 %v2283_v57  ;;  %v753_v36 = vunpack.c.l.bf16 %v566_v27  ;;  %v754_v37 = vunpack.c.h.bf16 %v566_v27  ;;  %v736_v38 = vunpack.c.l.bf16 %v2319_v29  ;;  %v2342_v52 = vld [vmem:[%s2235_s14 + $0x440] sm:$0xff]  ;;  %v2348_v57 = vld [vmem:[%s2235_s14 + $0x3f4] sm:$0xff]  ;;  %p1975_p13 = pnand %p1974_p12, %p1970_p8 }
 0x15f   : > { %1090 = vmatpush.msra.mxu2 %v888_v55  ;;  %1108 = vmatpush.msra.mxu3 %v927_v10  ;;  %v832_v40 = vunpack.c.h.bf16 %v2288_v62  ;;  %v734_v42 = vunpack.c.l.bf16 %v556_v33  ;;  %v735_v43 = vunpack.c.h.bf16 %v556_v33  ;;  %v717_v44 = vunpack.c.l.bf16 %v2325_v35  ;;  %v668_v62 = vld [vmem:[%s2235_s14 + $0x3ec] sm:$0xff]  ;;  %v658_v4 = vld [vmem:[%s2235_s14 + $0x3a0] sm:$0xff]  ;;  %v648_v10 = vld [vmem:[%s2235_s14 + $0x354] sm:$0xff] }
 0x160   : > { %1050 = vmatpush.msra.mxu0 %v886_v58  ;;  %1070 = vmatpush.msra.mxu1 %v887_v59  ;;  %v813_v47 = vunpack.c.h.bf16 %v2295_v5  ;;  %v715_v48 = vunpack.c.l.bf16 %v546_v39  ;;  %v716_v49 = vunpack.c.h.bf16 %v546_v39  ;;  %v698_v51 = vunpack.c.l.bf16 %v2331_v41  ;;  %v2359_v5 = vld [vmem:[%s2235_s14 + $0x35c] sm:$0xff]  ;;  %v608_v33 = vld [vmem:[%s2235_s14 + $0x224] sm:$0xff] }
 0x161   : > { %1091 = vmatpush.msra.mxu2 %v869_v60  ;;  %1109 = vmatpush.msra.mxu3 %v908_v16  ;;  %v794_v53 = vunpack.c.h.bf16 %v2301_v11  ;;  %v987_v54 = vunpack.c.l.bf16 %v2335_v45  ;;  %v696_v55 = vunpack.c.l.bf16 %v536_v46  ;;  %v697_v58 = vunpack.c.h.bf16 %v536_v46  ;;  %v2365_v11 = vld [vmem:[%s2235_s14 + $0x310] sm:$0xff]  ;;  %v638_v16 = vld [vmem:[%s2235_s14 + $0x308] sm:$0xff] }
 0x162   : > { %1051 = vmatpush.msra.mxu0 %v867_v63  ;;  %1071 = vmatpush.msra.mxu1 %v868_v0  ;;  %v985_v59 = vunpack.c.l.bf16 %v688_v50  ;;  %v968_v60 = vunpack.c.l.bf16 %v2342_v52  ;;  %v986_v61 = vunpack.c.h.bf16 %v688_v50  ;;  %v2353_v63 = vld [vmem:[%s2235_s14 + $0x3a8] sm:$0xff]  ;;  %v966_v0 = vunpack.c.l.bf16 %v678_v56 }
 0x163   : > { %1092 = vmatpush.msra.mxu2 %v850_v2  ;;  %1110 = vmatpush.msra.mxu3 %v889_v22  ;;  %v775_v1 = vunpack.c.h.bf16 %v2307_v17  ;;  %v949_v2 = vunpack.c.l.bf16 %v2348_v57  ;;  %v967_v3 = vunpack.c.h.bf16 %v678_v56  ;;  %v948_v9 = vunpack.c.h.bf16 %v668_v62  ;;  %v2371_v17 = vld [vmem:[%s2235_s14 + $0x2c4] sm:$0xff]  ;;  %v628_v22 = vld [vmem:[%s2235_s14 + $0x2bc] sm:$0xff]  ;;  %v588_v46 = vld [vmem:[%s2235_s14 + $0x18c] sm:$0xff] }
 0x164   : > { %1052 = vmatpush.msra.mxu0 %v848_v6  ;;  %1072 = vmatpush.msra.mxu1 %v849_v7  ;;  %v947_v6 = vunpack.c.l.bf16 %v668_v62  ;;  %v756_v7 = vunpack.c.h.bf16 %v2313_v23  ;;  %v929_v15 = vunpack.c.h.bf16 %v658_v4  ;;  %v910_v21 = vunpack.c.h.bf16 %v648_v10  ;;  %v2377_v23 = vld [vmem:[%s2235_s14 + $0x278] sm:$0xff] }
 0x165   : > { %1093 = vmatpush.msra.mxu2 %v831_v8  ;;  %1111 = vmatpush.msra.mxu3 %v870_v28  ;;  %v930_v8 = vunpack.c.l.bf16 %v2353_v63  ;;  %v891_v27 = vunpack.c.h.bf16 %v638_v16  ;;  %v618_v28 = vld [vmem:[%s2235_s14 + $0x270] sm:$0xff]  ;;  %v796_v56 = vunpack.c.h.bf16 %v588_v46 }
 0x166   : > { %1053 = vmatpush.msra.mxu0 %v829_v12  ;;  %1073 = vmatpush.msra.mxu1 %v830_v13  ;;  %v928_v12 = vunpack.c.l.bf16 %v658_v4  ;;  %v737_v13 = vunpack.c.h.bf16 %v2319_v29  ;;  %v2383_v29 = vld [vmem:[%s2235_s14 + $0x22c] sm:$0xff]  ;;  %v853_v39 = vunpack.c.h.bf16 %v618_v28 }
 0x167   : > { %1094 = vmatpush.msra.mxu2 %v812_v14  ;;  %1112 = vmatpush.msra.mxu3 %v851_v34  ;;  %v911_v14 = vunpack.c.l.bf16 %v2359_v5  ;;  %v2387_v34 = vld [vmem:[#allocation2] sm:$0xff] }
 0x168   : > { %1054 = vmatpush.msra.mxu0 %v810_v18  ;;  %1074 = vmatpush.msra.mxu1 %v811_v19  ;;  %v909_v18 = vunpack.c.l.bf16 %v648_v10  ;;  %v718_v19 = vunpack.c.h.bf16 %v2325_v35  ;;  %v2390_v35 = vld [vmem:[%s2235_s14 + $0x1e0] sm:$0xff] }
 0x169   : > { %1095 = vmatpush.msra.mxu2 %v793_v20  ;;  %1113 = vmatpush.msra.mxu3 %v832_v40  ;;  %v892_v20 = vunpack.c.l.bf16 %v2365_v11  ;;  %v598_v40 = vld [vmem:[%s2235_s14 + $0x1d8] sm:$0xff] }
 0x16a   : > { %1055 = vmatpush.msra.mxu0 %v791_v24  ;;  %1075 = vmatpush.msra.mxu1 %v792_v25  ;;  %v890_v24 = vunpack.c.l.bf16 %v638_v16  ;;  %v699_v25 = vunpack.c.h.bf16 %v2331_v41  ;;  %v2396_v41 = vld [vmem:[%s2235_s14 + $0x194] sm:$0xff]  ;;  %v2432_v10 = vld [vmem:[%s2235_s14 + $0x49c] sm:$0xff] }
 0x16b   : > { %1096 = vmatpush.msra.mxu2 %v774_v26  ;;  %1114 = vmatpush.msra.mxu3 %v813_v47  ;;  %v873_v26 = vunpack.c.l.bf16 %v2371_v17  ;;  %v2403_v47 = vld [vmem:[%s2235_s14 + $0x148] sm:$0xff]  ;;  %v797_v50 = vunpack.c.l.bf16 %v2396_v41  ;;  %v2438_v16 = vld [vmem:[%s2235_s14 + $0x450] sm:$0xff] }
 0x16c   : > { %1056 = vmatpush.msra.mxu0 %v772_v30  ;;  %1076 = vmatpush.msra.mxu1 %v773_v31  ;;  %v871_v30 = vunpack.c.l.bf16 %v628_v22  ;;  %v854_v31 = vunpack.c.l.bf16 %v2377_v23 }
 0x16d   : > { %1097 = vmatpush.msra.mxu2 %v755_v32  ;;  %1115 = vmatpush.msra.mxu3 %v794_v53  ;;  %v872_v32 = vunpack.c.h.bf16 %v628_v22  ;;  %v2409_v53 = vld [vmem:[%s2235_s14 + $0xfc] sm:$0xff]  ;;  %v2443_v22 = vld [vmem:[%s2235_s14 + $0x404] sm:$0xff] }
 0x16e   : > { %1057 = vmatpush.msra.mxu0 %v753_v36  ;;  %1077 = vmatpush.msra.mxu1 %v754_v37  ;;  %v852_v36 = vunpack.c.l.bf16 %v618_v28  ;;  %v988_v37 = vunpack.c.h.bf16 %v2335_v45  ;;  %v834_v45 = vunpack.c.h.bf16 %v608_v33  ;;  %v2448_v28 = vld [vmem:[%s2235_s14 + $0x3b8] sm:$0xff] }
 0x16f   : > { %1098 = vmatpush.msra.mxu2 %v736_v38  ;;  %1116 = vmatpush.msra.mxu3 %v775_v1  ;;  %v835_v38 = vunpack.c.l.bf16 %v2383_v29  ;;  %v2420_v1 = vld [vmem:[%s2235_s14 + $0x64] sm:$0xff] }
 0x170   : > { %1058 = vmatpush.msra.mxu0 %v734_v42  ;;  %1078 = vmatpush.msra.mxu1 %v735_v43  ;;  %v833_v42 = vunpack.c.l.bf16 %v608_v33  ;;  %v969_v43 = vunpack.c.h.bf16 %v2342_v52  ;;  %v578_v52 = vld [vmem:[%s2235_s14 + $0x140] sm:$0xff] }
 0x171   : > { %1099 = vmatpush.msra.mxu2 %v717_v44  ;;  %1117 = vmatpush.msra.mxu3 %v756_v7  ;;  %v816_v44 = vunpack.c.l.bf16 %v2390_v35  ;;  %v777_v62 = vunpack.c.h.bf16 %v578_v52  ;;  %v2427_v7 = vld [vmem:[%s2235_s14 + $0x18] sm:$0xff] }
 0x172   : > { %1059 = vmatpush.msra.mxu0 %v715_v48  ;;  %1079 = vmatpush.msra.mxu1 %v716_v49  ;;  %v814_v48 = vunpack.c.l.bf16 %v598_v40  ;;  %v950_v49 = vunpack.c.h.bf16 %v2348_v57  ;;  %v568_v57 = vld [vmem:[%s2235_s14 + $0xf4] sm:$0xff] }
 0x173   : > { %1100 = vmatpush.msra.mxu2 %v698_v51  ;;  %1118 = vmatpush.msra.mxu3 %v737_v13  ;;  %v815_v51 = vunpack.c.h.bf16 %v598_v40  ;;  %v758_v4 = vunpack.c.h.bf16 %v568_v57  ;;  %v538_v13 = vld [vmem:[%s2235_s14 + $0x10] sm:$0xff] }
 0x174   : > { %1060 = vmatpush.msra.mxu0 %v696_v55  ;;  %1080 = vmatpush.msra.mxu1 %v697_v58  ;;  %v778_v55 = vunpack.c.l.bf16 %v2403_v47  ;;  %v2414_v58 = vld [vmem:[%s2235_s14 + $0xb0] sm:$0xff] }
 0x175   : > { %1165 = vmatpush.msrb.mxu2 %v987_v54  ;;  %1119 = vmatpush.msra.mxu3 %v718_v19  ;;  %v795_v54 = vunpack.c.l.bf16 %v588_v46  ;;  %v690_v19 = vld [vmem:[%s2235_s14 + $0x494] sm:$0xff] }
 0x176   : > { %1125 = vmatpush.msrb.mxu0 %v985_v59  ;;  %1145 = vmatpush.msrb.mxu1 %v986_v61  ;;  %v776_v59 = vunpack.c.l.bf16 %v578_v52  ;;  %v759_v61 = vunpack.c.l.bf16 %v2409_v53 }
 0x177   : > { %1166 = vmatpush.msrb.mxu2 %v968_v60  ;;  %1120 = vmatpush.msra.mxu3 %v699_v25  ;;  %v931_v60 = vunpack.c.h.bf16 %v2353_v63  ;;  %v740_v63 = vunpack.c.l.bf16 %v2414_v58  ;;  %v972_v25 = vunpack.c.l.bf16 %v2438_v16 }
 0x178   : > { %1126 = vmatpush.msrb.mxu0 %v966_v0  ;;  %1146 = vmatpush.msrb.mxu1 %v967_v3  ;;  %v558_v0 = vld [vmem:[%s2235_s14 + $0xa8] sm:$0xff]  ;;  %v912_v3 = vunpack.c.h.bf16 %v2359_v5  ;;  %v721_v5 = vunpack.c.l.bf16 %v2420_v1 }
 0x179   : > { %1167 = vmatpush.msrb.mxu2 %v949_v2  ;;  %1185 = vmatpush.msrb.mxu3 %v988_v37  ;;  %v757_v2 = vunpack.c.l.bf16 %v568_v57  ;;  %v2455_v37 = vld [vmem:[%s2235_s14 + $0x36c] sm:$0xff]  ;;  %v779_v57 = vunpack.c.h.bf16 %v2403_v47 }
 0x17a   : > { %1127 = vmatpush.msrb.mxu0 %v947_v6  ;;  %1147 = vmatpush.msrb.mxu1 %v948_v9  ;;  %v548_v6 = vld [vmem:[%s2235_s14 + $0x5c] sm:$0xff]  ;;  %v893_v9 = vunpack.c.h.bf16 %v2365_v11  ;;  %v702_v11 = vunpack.c.l.bf16 %v2427_v7 }
 0x17b   : > { %1168 = vmatpush.msrb.mxu2 %v930_v8  ;;  %1186 = vmatpush.msrb.mxu3 %v969_v43  ;;  %v738_v8 = vunpack.c.l.bf16 %v558_v0  ;;  %v2461_v43 = vld [vmem:[%s2235_s14 + $0x320] sm:$0xff] }
 0x17c   : > { %1128 = vmatpush.msrb.mxu0 %v928_v12  ;;  %1148 = vmatpush.msrb.mxu1 %v929_v15  ;;  %v739_v12 = vunpack.c.h.bf16 %v558_v0  ;;  %v874_v15 = vunpack.c.h.bf16 %v2371_v17  ;;  %v701_v17 = vunpack.c.h.bf16 %v538_v13  ;;  %v760_v0 = vunpack.c.h.bf16 %v2409_v53 }
 0x17d   : > { %1169 = vmatpush.msrb.mxu2 %v911_v14  ;;  %1187 = vmatpush.msrb.mxu3 %v950_v49  ;;  %v719_v14 = vunpack.c.l.bf16 %v548_v6  ;;  %v2467_v49 = vld [vmem:[%s2235_s14 + $0x2d4] sm:$0xff] }
 0x17e   : > { %1129 = vmatpush.msrb.mxu0 %v909_v18  ;;  %1149 = vmatpush.msrb.mxu1 %v910_v21  ;;  %v720_v18 = vunpack.c.h.bf16 %v548_v6  ;;  %v700_v21 = vunpack.c.l.bf16 %v538_v13  ;;  %v741_v6 = vunpack.c.h.bf16 %v2414_v58  ;;  %v722_v13 = vunpack.c.h.bf16 %v2420_v1 }
 0x17f   : > { %1170 = vmatpush.msrb.mxu2 %v892_v20  ;;  %1081 = vmatmul.f32.vlgmr.msra.gmra.mxu1 %v2387_v34  ;;  %v991_v20 = vunpack.c.l.bf16 %v2432_v10 }
 0x180   : > { %1130 = vmatpush.msrb.mxu0 %v890_v24  ;;  %1150 = vmatpush.msrb.mxu1 %v891_v27  ;;  %v680_v24 = vld [vmem:[%s2235_s14 + $0x448] sm:$0xff]  ;;  %v990_v27 = vunpack.c.h.bf16 %v690_v19 }
 0x181   : > { %1171 = vmatpush.msrb.mxu2 %v873_v26  ;;  %1188 = vmatpush.msrb.mxu3 %v931_v60  ;;  %v989_v26 = vunpack.c.l.bf16 %v690_v19  ;;  %v970_v33 = vunpack.c.l.bf16 %v680_v24  ;;  %v703_v19 = vunpack.c.h.bf16 %v2427_v7 }
 0x182   : > { %1131 = vmatpush.msrb.mxu0 %v871_v30  ;;  %1101 = vmatmul.f32.vlgmr.msra.gmra.mxu2 %v2387_v34  ;;  %v670_v30 = vld [vmem:[%s2235_s14 + $0x3fc] sm:$0xff] }
 0x183   : > { %1172 = vmatpush.msrb.mxu2 %v854_v31  ;;  %1151 = vmatpush.msrb.mxu1 %v872_v32  ;;  %v855_v31 = vunpack.c.h.bf16 %v2377_v23  ;;  %v953_v32 = vunpack.c.l.bf16 %v2443_v22  ;;  %v934_v23 = vunpack.c.l.bf16 %v2448_v28  ;;  %v951_v40 = vunpack.c.l.bf16 %v670_v30 }
 0x184   : > { %1132 = vmatpush.msrb.mxu0 %v852_v36  ;;  %1189 = vmatpush.msrb.mxu3 %v912_v3  ;;  %v971_v36 = vunpack.c.h.bf16 %v680_v24  ;;  %v580_v24 = vld [vmem:[%s2235_s14 + $0x150] sm:$0xff] }
 0x185   : > { %1173 = vmatpush.msrb.mxu2 %v835_v38  ;;  %1152 = vmatpush.msrb.mxu1 %v853_v39  ;;  %v660_v38 = vld [vmem:[%s2235_s14 + $0x3b0] sm:$0xff]  ;;  %v836_v39 = vunpack.c.h.bf16 %v2383_v29  ;;  %v915_v29 = vunpack.c.l.bf16 %v2455_v37 }
 0x186   : > { %1133 = vmatpush.msrb.mxu0 %v833_v42  ;;  %1190 = vmatpush.msrb.mxu3 %v893_v9  ;;  %v952_v42 = vunpack.c.h.bf16 %v670_v30  ;;  %v932_v46 = vunpack.c.l.bf16 %v660_v38  ;;  %v570_v30 = vld [vmem:[%s2235_s14 + $0x104] sm:$0xff] }
 0x187   : > { %1174 = vmatpush.msrb.mxu2 %v816_v44  ;;  %1153 = vmatpush.msrb.mxu1 %v834_v45  ;;  %v650_v44 = vld [vmem:[%s2235_s14 + $0x364] sm:$0xff]  ;;  %v817_v45 = vunpack.c.h.bf16 %v2390_v35  ;;  %v896_v35 = vunpack.c.l.bf16 %v2461_v43 }
 0x188   : > { %1134 = vmatpush.msrb.mxu0 %v814_v48  ;;  %1191 = vmatpush.msrb.mxu3 %v874_v15  ;;  %v933_v48 = vunpack.c.h.bf16 %v660_v38  ;;  %v913_v52 = vunpack.c.l.bf16 %v650_v44  ;;  %v992_v38 = vunpack.c.h.bf16 %v2432_v10 }
 0x189   : > { %1175 = vmatpush.msrb.mxu2 %v797_v50  ;;  %1154 = vmatpush.msrb.mxu1 %v815_v51  ;;  %v640_v50 = vld [vmem:[%s2235_s14 + $0x318] sm:$0xff]  ;;  %v798_v51 = vunpack.c.h.bf16 %v2396_v41  ;;  %v877_v41 = vunpack.c.l.bf16 %v2467_v49 }
 0x18a   : > { %1135 = vmatpush.msrb.mxu0 %v795_v54  ;;  %1192 = vmatpush.msrb.mxu3 %v855_v31  ;;  %v914_v54 = vunpack.c.h.bf16 %v650_v44  ;;  %v895_v60 = vunpack.c.h.bf16 %v640_v50  ;;  %v2520_v44 = vld [vmem:[%s2235_s14 + $0x28] sm:$0xff] }
 0x18b   : > { %1176 = vmatpush.msrb.mxu2 %v778_v55  ;;  %1155 = vmatpush.msrb.mxu1 %v796_v56  ;;  %v2473_v55 = vld [vmem:[%s2235_s14 + $0x288] sm:$0xff] }
 0x18c   : > { %1136 = vmatpush.msrb.mxu0 %v776_v59  ;;  %1193 = vmatpush.msrb.mxu3 %v836_v39  ;;  %v630_v56 = vld [vmem:[%s2235_s14 + $0x2cc] sm:$0xff]  ;;  %v894_v59 = vunpack.c.l.bf16 %v640_v50  ;;  %v858_v47 = vunpack.c.l.bf16 %v2473_v55  ;;  %v560_v39 = vld [vmem:[%s2235_s14 + $0xb8] sm:$0xff] }
 0x18d   : > { %1177 = vmatpush.msrb.mxu2 %v759_v61  ;;  %1156 = vmatpush.msrb.mxu1 %v777_v62  ;;  %v2479_v61 = vld [vmem:[%s2235_s14 + $0x23c] sm:$0xff]  ;;  %v876_v3 = vunpack.c.h.bf16 %v630_v56  ;;  %v743_v50 = vunpack.c.h.bf16 %v560_v39 }
 0x18e   : > { %1137 = vmatpush.msrb.mxu0 %v757_v2  ;;  %1194 = vmatpush.msrb.mxu3 %v817_v45  ;;  %v620_v62 = vld [vmem:[%s2235_s14 + $0x280] sm:$0xff]  ;;  %v875_v2 = vunpack.c.l.bf16 %v630_v56  ;;  %v839_v53 = vunpack.c.l.bf16 %v2479_v61  ;;  %v973_v45 = vunpack.c.h.bf16 %v2438_v16  ;;  %v706_v16 = vunpack.c.l.bf16 %v2520_v44 }
 0x18f   : > { %1178 = vmatpush.msrb.mxu2 %v740_v63  ;;  %1157 = vmatpush.msrb.mxu1 %v758_v4  ;;  %v2485_v63 = vld [vmem:[%s2235_s14 + $0x1f0] sm:$0xff]  ;;  %v857_v9 = vunpack.c.h.bf16 %v620_v62 }
 0x190   : > { %1138 = vmatpush.msrb.mxu0 %v738_v8  ;;  %1195 = vmatpush.msrb.mxu3 %v798_v51  ;;  %v610_v4 = vld [vmem:[%s2235_s14 + $0x234] sm:$0xff]  ;;  %v856_v8 = vunpack.c.l.bf16 %v620_v62  ;;  %v820_v58 = vunpack.c.l.bf16 %v2485_v63  ;;  %v954_v51 = vunpack.c.h.bf16 %v2443_v22 }
 0x191   : > { %1179 = vmatpush.msrb.mxu2 %v721_v5  ;;  %1158 = vmatpush.msrb.mxu1 %v739_v12  ;;  %v2491_v5 = vld [vmem:[%s2235_s14 + $0x1a4] sm:$0xff]  ;;  %v838_v15 = vunpack.c.h.bf16 %v610_v4 }
 0x192   : > { %1139 = vmatpush.msrb.mxu0 %v719_v14  ;;  %1196 = vmatpush.msrb.mxu3 %v779_v57  ;;  %v600_v12 = vld [vmem:[%s2235_s14 + $0x1e8] sm:$0xff]  ;;  %v837_v14 = vunpack.c.l.bf16 %v610_v4  ;;  %v801_v1 = vunpack.c.l.bf16 %v2491_v5 }
 0x193   : > { %1180 = vmatpush.msrb.mxu2 %v702_v11  ;;  %1159 = vmatpush.msrb.mxu1 %v720_v18  ;;  %v2497_v11 = vld [vmem:[%s2235_s14 + $0x158] sm:$0xff] }
 0x194   : > { %1140 = vmatpush.msrb.mxu0 %v700_v21  ;;  %1197 = vmatpush.msrb.mxu3 %v760_v0  ;;  %v590_v18 = vld [vmem:[%s2235_s14 + $0x19c] sm:$0xff]  ;;  %v819_v21 = vunpack.c.h.bf16 %v600_v12  ;;  %v935_v0 = vunpack.c.h.bf16 %v2448_v28 }
 0x195   : > { %1245 = vmatpush.msra.mxu2 %v991_v20  ;;  %1160 = vmatpush.msrb.mxu1 %v701_v17  ;;  %v818_v20 = vunpack.c.l.bf16 %v600_v12  ;;  %v2503_v17 = vld [vmem:[%s2235_s14 + $0x10c] sm:$0xff]  ;;  %v799_v7 = vunpack.c.l.bf16 %v590_v18 }
 0x196   : > { %1061 = vmatmul.f32.vlgmr.msra.gmra.mxu0 %v2387_v34  ;;  %1198 = vmatpush.msrb.mxu3 %v741_v6  ;;  %v763_v31 = vunpack.c.l.bf16 %v2503_v17 }
 0x197   : > { %1246 = vmatpush.msra.mxu2 %v972_v25  ;;  %1205 = vmatpush.msra.mxu0 %v989_v26  ;;  %v782_v25 = vunpack.c.l.bf16 %v2497_v11  ;;  %v800_v26 = vunpack.c.h.bf16 %v590_v18 }
 0x198   : > { %1225 = vmatpush.msra.mxu1 %v990_v27  ;;  %1199 = vmatpush.msrb.mxu3 %v722_v13  ;;  %v2508_v27 = vld [vmem:[%s2235_s14 + $0xc0] sm:$0xff] }
 0x199   : > { %1247 = vmatpush.msra.mxu2 %v953_v32  ;;  %1206 = vmatpush.msra.mxu0 %v970_v33  ;;  %v780_v32 = vunpack.c.l.bf16 %v580_v24  ;;  %v781_v33 = vunpack.c.h.bf16 %v580_v24 }
 0x19a   : > { %1226 = vmatpush.msra.mxu1 %v971_v36  ;;  %1200 = vmatpush.msrb.mxu3 %v703_v19  ;;  %v2513_v36 = vld [vmem:[%s2235_s14 + $0x74] sm:$0xff] }
 0x19b   : > { %1248 = vmatpush.msra.mxu2 %v934_v23  ;;  %1207 = vmatpush.msra.mxu0 %v951_v40  ;;  %v744_v23 = vunpack.c.l.bf16 %v2508_v27  ;;  %v761_v40 = vunpack.c.l.bf16 %v570_v30  ;;  %v725_v10 = vunpack.c.l.bf16 %v2513_v36 }
 0x19c   : > { %1227 = vmatpush.msra.mxu1 %v952_v42  ;;  %1121 = vmatmul.f32.vlgmr.msra.gmra.mxu3 %v2387_v34  ;;  %v762_v42 = vunpack.c.h.bf16 %v570_v30  ;;  %v642_v30 = vld [vmem:[%s2235_s14 + $0x328] sm:$0xff] }
 0x19d   : > { %1249 = vmatpush.msra.mxu2 %v915_v29  ;;  %1208 = vmatpush.msra.mxu0 %v932_v46  ;;  %v550_v29 = vld [vmem:[%s2235_s14 + $0x6c] sm:$0xff] }
 0x19e   : > { %1228 = vmatpush.msra.mxu1 %v933_v48  ;;  %1181 = vmatmul.f32.vlgmr.msrb.gmra.mxu2 %v2387_v34  ;;  %v2527_v46 = vld [vmem:[%s2235_s14 + $0x4ac] sm:$0xff]  ;;  %v742_v48 = vunpack.c.l.bf16 %v560_v39  ;;  %v724_v57 = vunpack.c.h.bf16 %v550_v29  ;;  %v632_v39 = vld [vmem:[%s2235_s14 + $0x2dc] sm:$0xff] }
 0x19f   : > { %1250 = vmatpush.msra.mxu2 %v896_v35  ;;  %1209 = vmatpush.msra.mxu0 %v913_v52  ;;  %v540_v35 = vld [vmem:[%s2235_s14 + $0x20] sm:$0xff]  ;;  %v995_v56 = vunpack.c.l.bf16 %v2527_v46 }
 0x1a0   : > { %1229 = vmatpush.msra.mxu1 %v914_v54  ;;  %1265 = vmatpush.msra.mxu3 %v992_v38  ;;  %v2533_v52 = vld [vmem:[%s2235_s14 + $0x460] sm:$0xff]  ;;  %v723_v54 = vunpack.c.l.bf16 %v550_v29  ;;  %v704_v22 = vunpack.c.l.bf16 %v540_v35  ;;  %v705_v62 = vunpack.c.h.bf16 %v540_v35  ;;  %v2575_v38 = vld [vmem:[%s2235_s14 + $0x24c] sm:$0xff] }
 0x1a1   : > { %1251 = vmatpush.msra.mxu2 %v877_v41  ;;  %1210 = vmatpush.msra.mxu0 %v894_v59  ;;  %v2537_v41 = vld [vmem:[%s2235_s14 + $0x414] sm:$0xff]  ;;  %v692_v59 = vld [vmem:[%s2235_s14 + $0x4a4] sm:$0xff] }
 0x1a2   : > { %1230 = vmatpush.msra.mxu1 %v895_v60  ;;  %1266 = vmatpush.msra.mxu3 %v973_v45  ;;  %v976_v60 = vunpack.c.l.bf16 %v2533_v52  ;;  %v993_v4 = vunpack.c.l.bf16 %v692_v59  ;;  %v994_v6 = vunpack.c.h.bf16 %v692_v59  ;;  %v2581_v45 = vld [vmem:[%s2235_s14 + $0x200] sm:$0xff]  ;;  %v622_v29 = vld [vmem:[%s2235_s14 + $0x290] sm:$0xff] }
 0x1a3   : > { %1252 = vmatpush.msra.mxu2 %v858_v47  ;;  %1211 = vmatpush.msra.mxu0 %v875_v2  ;;  %v2543_v47 = vld [vmem:[%s2235_s14 + $0x3c8] sm:$0xff]  ;;  %v682_v2 = vld [vmem:[%s2235_s14 + $0x458] sm:$0xff] }
 0x1a4   : > { %1231 = vmatpush.msra.mxu1 %v876_v3  ;;  %1267 = vmatpush.msra.mxu3 %v954_v51  ;;  %v957_v3 = vunpack.c.l.bf16 %v2537_v41  ;;  %v938_v28 = vunpack.c.l.bf16 %v2543_v47  ;;  %v974_v12 = vunpack.c.l.bf16 %v682_v2  ;;  %v975_v13 = vunpack.c.h.bf16 %v682_v2  ;;  %v2587_v51 = vld [vmem:[%s2235_s14 + $0x1b4] sm:$0xff]  ;;  %v612_v35 = vld [vmem:[%s2235_s14 + $0x244] sm:$0xff]  ;;  %v592_v2 = vld [vmem:[%s2235_s14 + $0x1ac] sm:$0xff] }
 0x1a5   : > { %1253 = vmatpush.msra.mxu2 %v839_v53  ;;  %1212 = vmatpush.msra.mxu0 %v856_v8  ;;  %v916_v53 = vunpack.c.h.bf16 %v2455_v37  ;;  %v2550_v8 = vld [vmem:[%s2235_s14 + $0x37c] sm:$0xff]  ;;  %v841_v59 = vunpack.c.l.bf16 %v612_v35 }
 0x1a6   : > { %1232 = vmatpush.msra.mxu1 %v857_v9  ;;  %v672_v9 = vld [vmem:[%s2235_s14 + $0x40c] sm:$0xff]  ;;  %1141 = vmatmul.f32.vlgmr.msrb.gmra.mxu0 %v2387_v34  ;;  %v919_v37 = vunpack.c.l.bf16 %v2550_v8 }
 0x1a7   : > { %1254 = vmatpush.msra.mxu2 %v820_v58  ;;  %1213 = vmatpush.msra.mxu0 %v837_v14  ;;  %v897_v58 = vunpack.c.h.bf16 %v2461_v43  ;;  %v2557_v14 = vld [vmem:[%s2235_s14 + $0x330] sm:$0xff]  ;;  %v955_v18 = vunpack.c.l.bf16 %v672_v9  ;;  %v956_v19 = vunpack.c.h.bf16 %v672_v9  ;;  %v582_v9 = vld [vmem:[%s2235_s14 + $0x160] sm:$0xff] }
 0x1a8   : > { %1233 = vmatpush.msra.mxu1 %v838_v15  ;;  %1268 = vmatpush.msra.mxu3 %v935_v0  ;;  %v662_v15 = vld [vmem:[%s2235_s14 + $0x3c0] sm:$0xff]  ;;  %v900_v43 = vunpack.c.l.bf16 %v2557_v14 }
 0x1a9   : > { %1255 = vmatpush.msra.mxu2 %v801_v1  ;;  %1214 = vmatpush.msra.mxu0 %v818_v20  ;;  %v878_v1 = vunpack.c.h.bf16 %v2467_v49  ;;  %v2563_v20 = vld [vmem:[%s2235_s14 + $0x2e4] sm:$0xff]  ;;  %v936_v24 = vunpack.c.l.bf16 %v662_v15  ;;  %v2599_v0 = vld [vmem:[%s2235_s14 + $0x11c] sm:$0xff] }
 0x1aa   : > { %1234 = vmatpush.msra.mxu1 %v819_v21  ;;  %1269 = vmatpush.msra.mxu3 %v916_v53  ;;  %v652_v21 = vld [vmem:[%s2235_s14 + $0x374] sm:$0xff]  ;;  %v881_v49 = vunpack.c.l.bf16 %v2563_v20 }
 0x1ab   : > { %1256 = vmatpush.msra.mxu2 %v782_v25  ;;  %1215 = vmatpush.msra.mxu0 %v799_v7  ;;  %v937_v25 = vunpack.c.h.bf16 %v662_v15  ;;  %v859_v7 = vunpack.c.h.bf16 %v2473_v55  ;;  %v2605_v53 = vld [vmem:[%s2235_s14 + $0xd0] sm:$0xff] }
 0x1ac   : > { %1235 = vmatpush.msra.mxu1 %v800_v26  ;;  %1270 = vmatpush.msra.mxu3 %v897_v58  ;;  %v2569_v26 = vld [vmem:[%s2235_s14 + $0x298] sm:$0xff]  ;;  %v2611_v58 = vld [vmem:[%s2235_s14 + $0x84] sm:$0xff] }
 0x1ad   : > { %1257 = vmatpush.msra.mxu2 %v763_v31  ;;  %1216 = vmatpush.msra.mxu0 %v780_v32  ;;  %v917_v31 = vunpack.c.l.bf16 %v652_v21  ;;  %v918_v32 = vunpack.c.h.bf16 %v652_v21  ;;  %v862_v55 = vunpack.c.l.bf16 %v2569_v26  ;;  %v572_v15 = vld [vmem:[%s2235_s14 + $0x114] sm:$0xff] }
 0x1ae   : > { %1236 = vmatpush.msra.mxu1 %v781_v33  ;;  %1271 = vmatpush.msra.mxu3 %v878_v1  ;;  %v840_v33 = vunpack.c.h.bf16 %v2479_v61  ;;  %v843_v61 = vunpack.c.l.bf16 %v2575_v38  ;;  %v2617_v1 = vld [vmem:[%s2235_s14 + $0x38] sm:$0xff]  ;;  %v765_v21 = vunpack.c.l.bf16 %v572_v15 }
 0x1af   : > { %1258 = vmatpush.msra.mxu2 %v744_v23  ;;  %1217 = vmatpush.msra.mxu0 %v761_v40  ;;  %v898_v23 = vunpack.c.l.bf16 %v642_v30  ;;  %v899_v40 = vunpack.c.h.bf16 %v642_v30  ;;  %v552_v30 = vld [vmem:[%s2235_s14 + $0x7c] sm:$0xff] }
 0x1b0   : > { %1237 = vmatpush.msra.mxu1 %v762_v42  ;;  %1272 = vmatpush.msra.mxu3 %v859_v7  ;;  %v821_v42 = vunpack.c.h.bf16 %v2485_v63  ;;  %v824_v63 = vunpack.c.l.bf16 %v2581_v45  ;;  %v710_v7 = vunpack.c.l.bf16 %v2617_v1 }
 0x1b1   : > { %1259 = vmatpush.msra.mxu2 %v725_v10  ;;  %1218 = vmatpush.msra.mxu0 %v742_v48  ;;  %v879_v10 = vunpack.c.l.bf16 %v632_v39  ;;  %v880_v48 = vunpack.c.h.bf16 %v632_v39  ;;  %v542_v39 = vld [vmem:[%s2235_s14 + $0x30] sm:$0xff] }
 0x1b2   : > { %1238 = vmatpush.msra.mxu1 %v743_v50  ;;  %1273 = vmatpush.msra.mxu3 %v840_v33  ;;  %v802_v50 = vunpack.c.h.bf16 %v2491_v5  ;;  %v805_v5 = vunpack.c.l.bf16 %v2587_v51 }
 0x1b3   : > { %1260 = vmatpush.msra.mxu2 %v706_v16  ;;  %1219 = vmatpush.msra.mxu0 %v723_v54  ;;  %v860_v16 = vunpack.c.l.bf16 %v622_v29  ;;  %v861_v54 = vunpack.c.h.bf16 %v622_v29  ;;  %v958_v29 = vunpack.c.h.bf16 %v2537_v41 }
 0x1b4   : > { %1239 = vmatpush.msra.mxu1 %v724_v57  ;;  %1274 = vmatpush.msra.mxu3 %v821_v42  ;;  %v2593_v57 = vld [vmem:[%s2235_s14 + $0x168] sm:$0xff]  ;;  %v728_v42 = vunpack.c.h.bf16 %v552_v30 }
 0x1b5   : > { %1325 = vmatpush.msrb.mxu2 %v995_v56  ;;  %1220 = vmatpush.msra.mxu0 %v704_v22  ;;  %v783_v56 = vunpack.c.h.bf16 %v2497_v11  ;;  %v602_v22 = vld [vmem:[%s2235_s14 + $0x1f8] sm:$0xff]  ;;  %v786_v11 = vunpack.c.l.bf16 %v2593_v57 }
 0x1b6   : > { %1161 = vmatmul.f32.vlgmr.msrb.gmra.mxu1 %v2387_v34  ;;  %1275 = vmatpush.msra.mxu3 %v802_v50  ;;  %v665_v50 = vld [vmem:[%s2235_s14 + $0x3d8] sm:$0xf] }
 0x1b7   : > { %1326 = vmatpush.msrb.mxu2 %v976_v60  ;;  %1240 = vmatpush.msra.mxu1 %v705_v62  ;;  %v842_v60 = vunpack.c.h.bf16 %v612_v35  ;;  %v764_v62 = vunpack.c.h.bf16 %v2503_v17  ;;  %v767_v17 = vunpack.c.l.bf16 %v2599_v0  ;;  %v684_v35 = vld [vmem:[%s2235_s14 + $0x468] sm:$0xff] }
 0x1b8   : > { %1285 = vmatpush.msrb.mxu0 %v993_v4  ;;  %1276 = vmatpush.msra.mxu3 %v783_v56  ;;  %v823_v4 = vunpack.c.h.bf16 %v602_v22  ;;  %v942_v56 = vunpack.c.l.bf16 %v665_v50 }
 0x1b9   : > { %1327 = vmatpush.msrb.mxu2 %v957_v3  ;;  %1305 = vmatpush.msrb.mxu1 %v994_v6  ;;  %v822_v3 = vunpack.c.l.bf16 %v602_v22  ;;  %v745_v6 = vunpack.c.h.bf16 %v2508_v27  ;;  %v748_v27 = vunpack.c.l.bf16 %v2605_v53  ;;  %v674_v22 = vld [vmem:[%s2235_s14 + $0x41c] sm:$0xff] }
 0x1ba   : > { %1286 = vmatpush.msrb.mxu0 %v974_v12  ;;  %1277 = vmatpush.msra.mxu3 %v764_v62  ;;  %v804_v12 = vunpack.c.h.bf16 %v592_v2 }
 0x1bb   : > { %1328 = vmatpush.msrb.mxu2 %v938_v28  ;;  %1306 = vmatpush.msrb.mxu1 %v975_v13  ;;  %v803_v28 = vunpack.c.l.bf16 %v592_v2  ;;  %v726_v13 = vunpack.c.h.bf16 %v2513_v36  ;;  %v729_v36 = vunpack.c.l.bf16 %v2611_v58  ;;  %v664_v2 = vld [vmem:[%s2235_s14 + $0x3d0] sm:$0xff] }
 0x1bc   : > { %1287 = vmatpush.msrb.mxu0 %v955_v18  ;;  %1278 = vmatpush.msra.mxu3 %v745_v6  ;;  %v785_v18 = vunpack.c.h.bf16 %v582_v9 }
 0x1bd   : > { %1329 = vmatpush.msrb.mxu2 %v919_v37  ;;  %1307 = vmatpush.msrb.mxu1 %v956_v19  ;;  %v784_v37 = vunpack.c.l.bf16 %v582_v9  ;;  %v707_v19 = vunpack.c.h.bf16 %v2520_v44  ;;  %v996_v44 = vunpack.c.h.bf16 %v2527_v46  ;;  %v654_v9 = vld [vmem:[%s2235_s14 + $0x384] sm:$0xff] }
 0x1be   : > { %1288 = vmatpush.msrb.mxu0 %v936_v24  ;;  %1279 = vmatpush.msra.mxu3 %v726_v13  ;;  %v766_v24 = vunpack.c.h.bf16 %v572_v15  ;;  %v644_v13 = vld [vmem:[%s2235_s14 + $0x338] sm:$0xff]  ;;  %v863_v15 = vunpack.c.h.bf16 %v2569_v26 }
 0x1bf   : > { %1330 = vmatpush.msrb.mxu2 %v900_v43  ;;  %1308 = vmatpush.msrb.mxu1 %v937_v25  ;;  %v562_v43 = vld [vmem:[%s2235_s14 + $0xc8] sm:$0xff]  ;;  %v695_v25 = vld [vmem:[%s2235_s14 + $0x4bc] sm:$0xf] }
 0x1c0   : > { %1289 = vmatpush.msrb.mxu0 %v917_v31  ;;  %1280 = vmatpush.msra.mxu3 %v707_v19  ;;  %v685_v31 = vld [vmem:[%s2235_s14 + $0x470] sm:$0xf]  ;;  %v747_v33 = vunpack.c.h.bf16 %v562_v43 }
 0x1c1   : > { %1331 = vmatpush.msrb.mxu2 %v881_v49  ;;  %1309 = vmatpush.msrb.mxu1 %v918_v32  ;;  %v746_v49 = vunpack.c.l.bf16 %v562_v43  ;;  %v999_v32 = vunpack.c.l.bf16 %v695_v25  ;;  %v980_v46 = vunpack.c.l.bf16 %v685_v31  ;;  %v634_v19 = vld [vmem:[%s2235_s14 + $0x2ec] sm:$0xff]  ;;  %v624_v25 = vld [vmem:[%s2235_s14 + $0x2a0] sm:$0xff]  ;;  %v614_v31 = vld [vmem:[%s2235_s14 + $0x254] sm:$0xff] }
 0x1c2   : > { %1290 = vmatpush.msrb.mxu0 %v898_v23  ;;  %1201 = vmatmul.f32.vlgmr.msrb.gmra.mxu3 %v2387_v34  ;;  %v727_v23 = vunpack.c.l.bf16 %v552_v30  ;;  %v605_v43 = vld [vmem:[%s2235_s14 + $0x210] sm:$0xf]  ;;  %v595_v30 = vld [vmem:[%s2235_s14 + $0x1c4] sm:$0xf] }
 0x1c3   : > { %1332 = vmatpush.msrb.mxu2 %v862_v55  ;;  %1310 = vmatpush.msrb.mxu1 %v899_v40  ;;  %v977_v55 = vunpack.c.h.bf16 %v2533_v52  ;;  %v675_v40 = vld [vmem:[%s2235_s14 + $0x424] sm:$0xf] }
 0x1c4   : > { %1291 = vmatpush.msrb.mxu0 %v879_v10  ;;  %1345 = vmatpush.msrb.mxu3 %v996_v44  ;;  %v694_v10 = vld [vmem:[%s2235_s14 + $0x4b4] sm:$0xff]  ;;  %v961_v52 = vunpack.c.l.bf16 %v675_v40  ;;  %v883_v44 = vunpack.c.l.bf16 %v634_v19  ;;  %v845_v40 = vunpack.c.l.bf16 %v614_v31 }
 0x1c5   : > { %1333 = vmatpush.msrb.mxu2 %v843_v61  ;;  %1311 = vmatpush.msrb.mxu1 %v880_v48  ;;  %v708_v61 = vunpack.c.l.bf16 %v542_v39  ;;  %v709_v48 = vunpack.c.h.bf16 %v542_v39  ;;  %v998_v41 = vunpack.c.h.bf16 %v694_v10  ;;  %v585_v39 = vld [vmem:[%s2235_s14 + $0x178] sm:$0xf] }
 0x1c6   : > { %1292 = vmatpush.msrb.mxu0 %v860_v16  ;;  %1261 = vmatmul.f32.vlgmr.msra.gmra.mxu2 %v2387_v34  ;;  %v997_v16 = vunpack.c.l.bf16 %v694_v10  ;;  %v768_v10 = vunpack.c.h.bf16 %v2599_v0 }
 0x1c7   : > { %1334 = vmatpush.msrb.mxu2 %v824_v63  ;;  %1312 = vmatpush.msrb.mxu1 %v861_v54  ;;  %v939_v63 = vunpack.c.h.bf16 %v2543_v47  ;;  %v655_v54 = vld [vmem:[%s2235_s14 + $0x38c] sm:$0xf]  ;;  %v979_v47 = vunpack.c.h.bf16 %v684_v35 }
 0x1c8   : > { %1293 = vmatpush.msrb.mxu0 %v841_v59  ;;  %1346 = vmatpush.msrb.mxu3 %v977_v55  ;;  %v978_v59 = vunpack.c.l.bf16 %v684_v35  ;;  %v923_v62 = vunpack.c.l.bf16 %v655_v54  ;;  %v865_v55 = vunpack.c.h.bf16 %v624_v25  ;;  %v584_v35 = vld [vmem:[%s2235_s14 + $0x170] sm:$0xff] }
 0x1c9   : > { %1335 = vmatpush.msrb.mxu2 %v805_v5  ;;  %1313 = vmatpush.msrb.mxu1 %v842_v60  ;;  %v920_v5 = vunpack.c.h.bf16 %v2550_v8  ;;  %v645_v60 = vld [vmem:[%s2235_s14 + $0x340] sm:$0xf]  ;;  %v960_v8 = vunpack.c.h.bf16 %v674_v22  ;;  %v555_v54 = vld [vmem:[%s2235_s14 + $0x94] sm:$0xf] }
 0x1ca   : > { %1294 = vmatpush.msrb.mxu0 %v822_v3  ;;  %1347 = vmatpush.msrb.mxu3 %v958_v29  ;;  %v959_v3 = vunpack.c.l.bf16 %v674_v22  ;;  %v904_v6 = vunpack.c.l.bf16 %v645_v60  ;;  %v575_v29 = vld [vmem:[%s2235_s14 + $0x12c] sm:$0xf]  ;;  %v730_v22 = vunpack.c.h.bf16 %v2611_v58  ;;  %v789_v60 = vunpack.c.h.bf16 %v584_v35 }
 0x1cb   : > { %1336 = vmatpush.msrb.mxu2 %v786_v11  ;;  %1314 = vmatpush.msrb.mxu1 %v823_v4  ;;  %v901_v11 = vunpack.c.h.bf16 %v2557_v14  ;;  %v635_v4 = vld [vmem:[%s2235_s14 + $0x2f4] sm:$0xf]  ;;  %v771_v50 = vunpack.c.l.bf16 %v575_v29 }
 0x1cc   : > { %1295 = vmatpush.msrb.mxu0 %v803_v28  ;;  %1241 = vmatmul.f32.vlgmr.msra.gmra.mxu1 %v2387_v34  ;;  %v625_v28 = vld [vmem:[%s2235_s14 + $0x2a8] sm:$0xf]  ;;  %v885_v14 = vunpack.c.l.bf16 %v635_v4  ;;  %v554_v4 = vld [vmem:[%s2235_s14 + $0x8c] sm:$0xff] }
 0x1cd   : > { %1337 = vmatpush.msrb.mxu2 %v767_v17  ;;  %1315 = vmatpush.msrb.mxu1 %v804_v12  ;;  %v940_v17 = vunpack.c.l.bf16 %v664_v2  ;;  %v941_v12 = vunpack.c.h.bf16 %v664_v2 }
 0x1ce   : > { %1296 = vmatpush.msrb.mxu0 %v784_v37  ;;  %1348 = vmatpush.msrb.mxu3 %v939_v63  ;;  %v615_v37 = vld [vmem:[%s2235_s14 + $0x25c] sm:$0xf]  ;;  %v749_v63 = vunpack.c.h.bf16 %v2605_v53  ;;  %v733_v53 = vunpack.c.l.bf16 %v555_v54 }
 0x1cf   : > { %1338 = vmatpush.msrb.mxu2 %v748_v27  ;;  %1316 = vmatpush.msrb.mxu1 %v785_v18  ;;  %v921_v27 = vunpack.c.l.bf16 %v654_v9  ;;  %v922_v18 = vunpack.c.h.bf16 %v654_v9  ;;  %v847_v26 = vunpack.c.l.bf16 %v615_v37  ;;  %v544_v9 = vld [vmem:[%s2235_s14 + $0x40] sm:$0xff] }
 0x1d0   : > { %1297 = vmatpush.msrb.mxu0 %v765_v21  ;;  %1349 = vmatpush.msrb.mxu3 %v920_v5  ;;  %v902_v21 = vunpack.c.l.bf16 %v644_v13  ;;  %v788_v5 = vunpack.c.l.bf16 %v584_v35 }
 0x1d1   : > { %1339 = vmatpush.msrb.mxu2 %v729_v36  ;;  %1317 = vmatpush.msrb.mxu1 %v766_v24  ;;  %v844_v36 = vunpack.c.h.bf16 %v2575_v38  ;;  %v903_v24 = vunpack.c.h.bf16 %v644_v13  ;;  %v828_v38 = vunpack.c.l.bf16 %v605_v43 }
 0x1d2   : > { %1298 = vmatpush.msrb.mxu0 %v746_v49  ;;  %1350 = vmatpush.msrb.mxu3 %v901_v11  ;;  %v884_v49 = vunpack.c.h.bf16 %v634_v19  ;;  %v564_v11 = vld [vmem:[%s2235_s14 + $0xd8] sm:$0xff] }
 0x1d3   : > { %1340 = vmatpush.msrb.mxu2 %v710_v7  ;;  %1318 = vmatpush.msrb.mxu1 %v747_v33  ;;  %v825_v7 = vunpack.c.h.bf16 %v2581_v45  ;;  %v864_v33 = vunpack.c.l.bf16 %v624_v25  ;;  %v809_v45 = vunpack.c.l.bf16 %v595_v30 }
 0x1d4   : > { %1299 = vmatpush.msrb.mxu0 %v727_v23  ;;  %v787_v23 = vunpack.c.h.bf16 %v2593_v57 }
 0x1d5   : > { %1405 = vmatpush.msra.mxu2 %v999_v32  ;;  %1319 = vmatpush.msrb.mxu1 %v728_v42  ;;  %v806_v32 = vunpack.c.h.bf16 %v2587_v51  ;;  %v846_v42 = vunpack.c.h.bf16 %v614_v31  ;;  %v790_v51 = vunpack.c.l.bf16 %v585_v39 }
 0x1d6   : > { %1300 = vmatpush.msrb.mxu0 %v708_v61  ;;  %v594_v61 = vld [vmem:[%s2235_s14 + $0x1bc] sm:$0xff] }
 0x1d7   : > { %1406 = vmatpush.msra.mxu2 %v980_v46  ;;  %1320 = vmatpush.msrb.mxu1 %v709_v48  ;;  %v604_v46 = vld [vmem:[%s2235_s14 + $0x208] sm:$0xff]  ;;  %v565_v48 = vld [vmem:[%s2235_s14 + $0xe0] sm:$0xf] }
 0x1d8   : > { %1221 = vmatmul.f32.vlgmr.msra.gmra.mxu0 %v2387_v34  ;;  %v882_v34 = vunpack.c.h.bf16 %v2563_v20  ;;  %v866_v20 = vunpack.c.l.bf16 %v625_v28  ;;  %v827_v57 = vunpack.c.h.bf16 %v604_v46  ;;  %v752_v0 = vunpack.c.l.bf16 %v565_v48 }
 0x1d9   : > { %1407 = vmatpush.msra.mxu2 %v961_v52  ;;  %1365 = vmatpush.msra.mxu0 %v997_v16  ;;  %v826_v52 = vunpack.c.l.bf16 %v604_v46  ;;  %v807_v16 = vunpack.c.l.bf16 %v594_v61  ;;  %v713_v28 = vunpack.c.h.bf16 %v544_v9 }
 0x1da   : > { %1385 = vmatpush.msra.mxu1 %v998_v41  ;;  %1351 = vmatpush.msrb.mxu3 %v882_v34  ;;  %v1770_v41 = vld [vmem:[#allocation2] sm:$0xff]  ;;  %v732_v34 = vunpack.c.h.bf16 %v554_v4 }
 0x1db   : > { %1408 = vmatpush.msra.mxu2 %v942_v56  ;;  %1366 = vmatpush.msra.mxu0 %v978_v59  ;;  %v808_v56 = vunpack.c.h.bf16 %v594_v61  ;;  %v574_v59 = vld [vmem:[%s2235_s14 + $0x124] sm:$0xff] }
 0x1dc   : > { %1386 = vmatpush.msra.mxu1 %v979_v47  ;;  %1352 = vmatpush.msrb.mxu3 %v863_v15  ;;  %v545_v47 = vld [vmem:[%s2235_s14 + $0x48] sm:$0xf]  ;;  %v769_v2 = vunpack.c.l.bf16 %v574_v59  ;;  %v770_v58 = vunpack.c.h.bf16 %v574_v59  ;;  %v1003_v59 = vld [vmem:[%s2243_s17 + $0x10] sm:$0x7] }
 0x1dd   : > { %1409 = vmatpush.msra.mxu2 %v923_v62  ;;  %1367 = vmatpush.msra.mxu0 %v959_v3  ;;  %v711_v62 = vunpack.c.h.bf16 %v2617_v1  ;;  %v714_v3 = vunpack.c.l.bf16 %v545_v47  ;;  %v731_v1 = vunpack.c.l.bf16 %v554_v4  ;;  %v1024_v47 = vperm.slane %v1003_v59, 1 }
 0x1de   : > { %1387 = vmatpush.msra.mxu1 %v960_v8  ;;  %1353 = vmatpush.msrb.mxu3 %v844_v36  ;;  %v750_v8 = vunpack.c.l.bf16 %v564_v11 }
 0x1df   : > { %1410 = vmatpush.msra.mxu2 %v904_v6  ;;  %1368 = vmatpush.msra.mxu0 %v940_v17  ;;  %v751_v6 = vunpack.c.h.bf16 %v564_v11  ;;  %v712_v17 = vunpack.c.l.bf16 %v544_v9 }
 0x1e0   : > { %1388 = vmatpush.msra.mxu1 %v941_v12  ;;  %1354 = vmatpush.msrb.mxu3 %v825_v7  ;;  %v1001_v12 = vld [vmem:[%s2243_s17] sm:$0xff] }
 0x1e1   : > { %1411 = vmatpush.msra.mxu2 %v885_v14  ;;  %1369 = vmatpush.msra.mxu0 %v921_v27  ;;  %v1009_v14 = vperm.slane %v1001_v12, 2  ;;  %v1008_v13 = vperm.slane %v1001_v12, 1  ;;  %v1013_v43 = vperm.slane %v1001_v12, 6  ;;  %v1012_v25 = vperm.slane %v1001_v12, 5 }
 0x1e2   : > { %1389 = vmatpush.msra.mxu1 %v922_v18  ;;  %1355 = vmatpush.msrb.mxu3 %v806_v32  ;;  %v1011_v30 = vperm.slane %v1001_v12, 4  ;;  %v1014_v39 = vperm.slane %v1001_v12, 7 }
 0x1e3   : > { %1412 = vmatpush.msra.mxu2 %v866_v20  ;;  %1370 = vmatpush.msra.mxu0 %v902_v21  ;;  %v1007_v20 = vperm.slane %v1001_v12, 0  ;;  %v1010_v21 = vperm.slane %v1001_v12, 3 }
 0x1e4   : > { %1390 = vmatpush.msra.mxu1 %v903_v24  ;;  %1356 = vmatpush.msrb.mxu3 %v787_v23 }
 0x1e5   : > { %1413 = vmatpush.msra.mxu2 %v847_v26  ;;  %1371 = vmatpush.msra.mxu0 %v883_v44 }
 0x1e6   : > { %1391 = vmatpush.msra.mxu1 %v884_v49  ;;  %1281 = vmatmul.f32.vlgmr.msra.gmra.mxu3 %v1770_v41 }
 0x1e7   : > { %1414 = vmatpush.msra.mxu2 %v828_v38  ;;  %1372 = vmatpush.msra.mxu0 %v864_v33  ;;  %v1002_v33 = vld [vmem:[%s2243_s17 + $0x8] sm:$0xff] }
 0x1e8   : > { %1392 = vmatpush.msra.mxu1 %v865_v55  ;;  %1341 = vmatmul.f32.vlgmr.msrb.gmra.mxu2 %v1770_v41  ;;  %v1015_v55 = vperm.slane %v1002_v33, 0  ;;  %v1018_v48 = vperm.slane %v1002_v33, 3  ;;  %v1021_v35 = vperm.slane %v1002_v33, 6 }
 0x1e9   : > { %1415 = vmatpush.msra.mxu2 %v809_v45  ;;  %1373 = vmatpush.msra.mxu0 %v845_v40  ;;  %v1016_v45 = vperm.slane %v1002_v33, 1  ;;  %v1017_v40 = vperm.slane %v1002_v33, 2 }
 0x1ea   : > { %1393 = vmatpush.msra.mxu1 %v846_v42  ;;  %1357 = vmatpush.msrb.mxu3 %v768_v10 }
 0x1eb   : > { %1416 = vmatpush.msra.mxu2 %v790_v51  ;;  %1374 = vmatpush.msra.mxu0 %v826_v52 }
 0x1ec   : > { %1394 = vmatpush.msra.mxu1 %v827_v57  ;;  %1358 = vmatpush.msrb.mxu3 %v749_v63  ;;  %v1019_v57 = vperm.slane %v1002_v33, 4 }
 0x1ed   : > { %1417 = vmatpush.msra.mxu2 %v771_v50  ;;  %1375 = vmatpush.msra.mxu0 %v807_v16  ;;  %v1020_v50 = vperm.slane %v1002_v33, 5 }
 0x1ee   : > { %1395 = vmatpush.msra.mxu1 %v808_v56  ;;  %1359 = vmatpush.msrb.mxu3 %v730_v22 }
 0x1ef   : > { %1418 = vmatpush.msra.mxu2 %v752_v0  ;;  %1376 = vmatpush.msra.mxu0 %v788_v5 }
 0x1f0   : > { %1396 = vmatpush.msra.mxu1 %v789_v60  ;;  %1301 = vmatmul.f32.vlgmr.msrb.gmra.mxu0 %v1770_v41  ;;  %v1022_v60 = vperm.slane %v1002_v33, 7 }
 0x1f1   : > { %1419 = vmatpush.msra.mxu2 %v733_v53  ;;  %1321 = vmatmul.f32.vlgmr.msrb.gmra.mxu1 %v1770_v41  ;;  %v1023_v53 = vperm.slane %v1003_v59, 0 }
 0x1f2   : > { %1360 = vmatpush.msrb.mxu3 %v711_v62  ;;  %1377 = vmatpush.msra.mxu0 %v769_v2  ;;  %v1025_v62 = vperm.slane %v1003_v59, 2 }
 0x1f3   : > { %1397 = vmatpush.msra.mxu1 %v770_v58  ;;  %1420 = vmatpush.msra.mxu2 %v714_v3 }
 0x1f4   : > { %1361 = vmatmul.f32.vlgmr.msrb.gmra.mxu3 %v1770_v41  ;;  %1421 = vmatmul.f32.vlgmr.msra.gmra.mxu2 %v1770_v41 }
 0x1f5   : > { %1378 = vmatpush.msra.mxu0 %v750_v8  ;;  %1398 = vmatpush.msra.mxu1 %v751_v6 }
 0x1f7   : > { %1379 = vmatpush.msra.mxu0 %v731_v1  ;;  %1399 = vmatpush.msra.mxu1 %v732_v34 }
 0x1f9   : > { %1380 = vmatpush.msra.mxu0 %v712_v17  ;;  %1400 = vmatpush.msra.mxu1 %v713_v28 }
 0x1fa   : > { %1381 = vmatmul.f32.vlgmr.msra.gmra.mxu0 %v1770_v41  ;;  %1401 = vmatmul.f32.vlgmr.msra.gmra.mxu1 %v1770_v41 }
 0x1fc   : > { %v1082_v37 = vpop.f32.mrf.mxu1 }
 0x1fd   : > { %v1083_v18 = vadd.f32 %v1082_v37, %v1008_v13 }
 0x1ff   : > { %1426 = vst [vmem:[%s2245_s21 + $0x8] sm:$0xff] %v1083_v18 }
 0x205   : > { %v1102_v15 = vpop.f32.mrf.mxu2 }
 0x206   : > { %v1103_v27 = vadd.f32 %v1102_v15, %v1009_v14 }
 0x208   : > { %1427 = vst [vmem:[%s2245_s21 + $0x10] sm:$0xff] %v1103_v27 }
 0x213   : > { %v1062_v19 = vpop.f32.mrf.mxu0 }
 0x214   : > { %v1063_v36 = vadd.f32 %v1062_v19, %v1007_v20 }
 0x216   : > { %1425 = vst [vmem:[%s2245_s21] sm:$0xff] %v1063_v36 }
 0x21f   : > { %v1122_v24 = vpop.f32.mrf.mxu3 }
 0x220   : > { %v1123_v26 = vadd.f32 %v1122_v24, %v1010_v21 }
 0x221   : > { %v1182_v7 = vpop.f32.mrf.mxu2 }
 0x222   : > { %1428 = vst [vmem:[%s2245_s21 + $0x18] sm:$0xff] %v1123_v26  ;;  %v1183_v44 = vadd.f32 %v1182_v7, %v1013_v43 }
 0x223   : > { %v1142_v31 = vpop.f32.mrf.mxu0 }
 0x224   : > { %1431 = vst [vmem:[%s2245_s21 + $0x30] sm:$0xff] %v1183_v44  ;;  %v1143_v32 = vadd.f32 %v1142_v31, %v1011_v30 }
 0x226   : > { %1429 = vst [vmem:[%s2245_s21 + $0x20] sm:$0xff] %v1143_v32 }
 0x233   : > { %v1162_v49 = vpop.f32.mrf.mxu1 }
 0x234   : > { %v1163_v38 = vadd.f32 %v1162_v49, %v1012_v25 }
 0x236   : > { %1430 = vst [vmem:[%s2245_s21 + $0x28] sm:$0xff] %v1163_v38 }
 0x245   : > { %v1202_v23 = vpop.f32.mrf.mxu3 }
 0x246   : > { %v1203_v46 = vadd.f32 %v1202_v23, %v1014_v39 }
 0x248   : > { %1432 = vst [vmem:[%s2245_s21 + $0x38] sm:$0xff] %v1203_v46 }
 0x249   : > { %v1242_v51 = vpop.f32.mrf.mxu1  ;;  %v1262_v10 = vpop.f32.mrf.mxu2 }
 0x24a   : > { %v1243_v61 = vadd.f32 %v1242_v51, %v1016_v45  ;;  %v1263_v52 = vadd.f32 %v1262_v10, %v1017_v40 }
 0x24c   : > { %1434 = vst [vmem:[%s2245_s21 + $0x48] sm:$0xff] %v1243_v61 }
 0x24d   : > { %1435 = vst [vmem:[%s2245_s21 + $0x50] sm:$0xff] %v1263_v52 }
 0x255   : > { %v1222_v42 = vpop.f32.mrf.mxu0 }
 0x256   : > { %v1223_v29 = vadd.f32 %v1222_v42, %v1015_v55 }
 0x258   : > { %1433 = vst [vmem:[%s2245_s21 + $0x40] sm:$0xff] %v1223_v29 }
 0x269   : > { %v1282_v63 = vpop.f32.mrf.mxu3 }
 0x26a   : > { %v1283_v54 = vadd.f32 %v1282_v63, %v1018_v48 }
 0x26b   : > { %v1342_v16 = vpop.f32.mrf.mxu2 }
 0x26c   : > { %v1343_v5 = vadd.f32 %v1342_v16, %v1021_v35  ;;  %1436 = vst [vmem:[%s2245_s21 + $0x58] sm:$0xff] %v1283_v54 }
 0x26d   : > { %v1302_v41 = vpop.f32.mrf.mxu0 }
 0x26e   : > { %v1322_v56 = vpop.f32.mrf.mxu1  ;;  %v1303_v0 = vadd.f32 %v1302_v41, %v1019_v57  ;;  %1439 = vst [vmem:[%s2245_s21 + $0x70] sm:$0xff] %v1343_v5 }
 0x26f   : > { %v1323_v22 = vadd.f32 %v1322_v56, %v1020_v50 }
 0x270   : > { %1437 = vst [vmem:[%s2245_s21 + $0x60] sm:$0xff] %v1303_v0 }
 0x271   : > { %1438 = vst [vmem:[%s2245_s21 + $0x68] sm:$0xff] %v1323_v22 }
 0x277   : > { %v1362_v2 = vpop.f32.mrf.mxu3  ;;  %v1382_v11 = vpop.f32.mrf.mxu0 }
 0x278   : > { %v1363_v58 = vadd.f32 %v1362_v2, %v1022_v60  ;;  %v1383_v3 = vadd.f32 %v1382_v11, %v1023_v53  ;;  %v1402_v4 = vpop.f32.mrf.mxu1  ;;  %v1422_v8 = vpop.f32.mrf.mxu2 }
 0x279   : > { %v1403_v6 = vadd.f32 %v1402_v4, %v1024_v47  ;;  %v1423_v9 = vadd.f32 %v1422_v8, %v1025_v62 }
 0x27a   : > { %1440 = vst [vmem:[%s2245_s21 + $0x78] sm:$0xff] %v1363_v58 }
 0x27b   : > { %1441 = vst [vmem:[%s2245_s21 + $0x80] sm:$0xff] %v1383_v3 }
 0x27c   : > { %1442 = vst [vmem:[%s2245_s21 + $0x88] sm:$0xff] %v1403_v6 }
 0x27d   : > { %1443 = vst [vmem:[%s2245_s21 + $0x90] sm:$0xff] %v1423_v9 }
 0x27e   : > { %1978 = shalt.err (!%p1975_p13)
}
 0x27f   : > { %1676 = dma.vmem_to_hbm [thread:$0]  (%p2177_p5), %s1463_s27, 2432, %s1465_s13, %s1445_s8  }
 0x280 PF: > { %s2770_s3 = sld [smem:[#allocation21_spill]] }
 0x281   : > { %s2771_s26 = sld [smem:[#allocation19_spill]] }
 0x286   : > { %p1711_p0 = scmp.ge.s32.totalorder %s2770_s3, 2 }
 0x287   : > { %s1476_s14 = sand.u32 1, %s2771_s26  }
 0x288   : > { %p1699_p3 = pnand %p1711_p0, %p2140_p6  ;;  %s1477_s20 = scalar_lea.sflag [#allocation5], %s1476_s14 }
 0x28a   : > { %p1700_p7 = pneg %p1699_p3 }
 0x28c   : > { %2020 = dma.done.wait (%p1700_p7), %s1477_s20, 2432  }
 0x28d   : > { %2022 = vsyncadd (%p1700_p7), %s1477_s20, 4294964864  ;;  %s23_s29 = sadd.s32 1, %s2770_s3   ;;  %s2773_s15 = sld [smem:[#allocation20_spill]] }
 0x28e   : > { %p20_p9 = scmp.ge.s32.totalorder %s23_s29, 6   ;;  %s2774_s26 = sld [smem:[#allocation24_spill]] }
 0x28f   : > { %s2775_s11 = sld [smem:[#allocation23_spill]]  ;;  %s2776_s24 = smov %s2029_s25 }
 0x290   : > { %s2778_s27 = smov %s2041_s28 }
 0x291   :  { %22 = sbr.rel (!%p20_p9) target bundleno = 12 (0xc), region = 126 }
 0x293   : > { %s2777_s25 = smov %s2773_s15 }
 0x295   : > { %s2779_s28 = smov %s2775_s11 }
 0x296   :  { %1483 = vsyncpa [#allocation4], 1 }
 0x297   :  { %1485 = vsyncpa [#allocation4 + $0x1], 1 }
 0x298   :  { %1486 = vsyncpa [#allocation7], 1 }
 0x299   :  { %1487 = vsyncpa [#allocation10], 1 }
 0x29a   :  { %1488 = vsyncpa [#allocation5], 1 }
 0x29b   :  { %1490 = vsyncpa [#allocation5 + $0x1], 1 }

</bundles_post_ra>
